<compile_context>
chip_gen: v5e
topology: v5e:2x2
jax: 0.10.0
libtpu: 0.0.40
codegen_flags: <defaults>
</compile_context>

<pallas_src>
import functools

import jax
import jax.numpy as jnp
from jax import lax
from jax.experimental import pallas as pl
from jax.experimental.pallas import tpu as pltpu

NEG_SLOPE = 0.2
BN_EPS = 1e-5
LANE = 128
VMEM_LIMIT = 48 * 1024 * 1024


def _round_up(x, m):
    return (x + m - 1) // m * m


def _choose_row_tiling(m, pref):
    """Large row tile (multiple of 8) + padded row count (multiple of the tile)."""
    if m <= pref:
        tile = _round_up(m, 8)
        return tile, tile
    n_tiles = -(-m // pref)
    tile = _round_up(-(-m // n_tiles), 8)
    return _round_up(m, tile), tile


# --------------------------- down-conv GEMM kernel -------------------------- #
# LeakyReLU(0.2) -> Conv2d(k=4,s=2,p=1) as GEMM -> +bias -> ReLU (uprelu fused).
# Grid = (M tiles, K tiles); f32 accumulator in VMEM; lane-dense padded output.

def _down_gemm_kernel(p_ref, w_ref, b_ref, o_ref, acc_ref, *, n_k):
    k = pl.program_id(1)

    @pl.when(k == 0)
    def _():
        acc_ref[...] = jnp.zeros_like(acc_ref)

    p = p_ref[...]                                     # bf16 patches
    p = jnp.where(p > 0, p, p * NEG_SLOPE)             # LeakyReLU fused on conv input
    acc_ref[...] += jnp.dot(p, w_ref[...], preferred_element_type=jnp.float32)

    @pl.when(k == n_k - 1)
    def _():
        o_ref[...] = jnp.maximum(acc_ref[...] + b_ref[...], 0.0)   # bias + ReLU fused


def down_conv(patches, w, b, *, tile_m_pref=512, tile_k_pref=512):
    """patches (M, K) bf16, w (K, c_pad) bf16, b (c_pad,) f32 -> (M, c_pad) f32."""
    M, K = patches.shape
    c_pad = w.shape[1]
    m_pad, tile_m = _choose_row_tiling(M, tile_m_pref)
    if K <= tile_k_pref:
        tile_k, k_pad = K, K
    else:
        tile_k = tile_k_pref
        k_pad = _round_up(K, tile_k)
    if (m_pad, k_pad) != (M, K):
        patches = jnp.pad(patches, ((0, m_pad - M), (0, k_pad - K)))
    if k_pad != K:
        w = jnp.pad(w, ((0, k_pad - K), (0, 0)))
    n_k = k_pad // tile_k

    out = pl.pallas_call(
        functools.partial(_down_gemm_kernel, n_k=n_k),
        out_shape=jax.ShapeDtypeStruct((m_pad, c_pad), jnp.float32),
        grid_spec=pltpu.PrefetchScalarGridSpec(
            num_scalar_prefetch=0,
            grid=(m_pad // tile_m, n_k),
            in_specs=[
                pl.BlockSpec((tile_m, tile_k), lambda i, k: (i, k)),
                pl.BlockSpec((tile_k, c_pad), lambda i, k: (k, 0)),
                pl.BlockSpec((1, c_pad), lambda i, k: (0, 0)),
            ],
            out_specs=pl.BlockSpec((tile_m, c_pad), lambda i, k: (i, 0)),
            scratch_shapes=[pltpu.VMEM((tile_m, c_pad), jnp.float32)],
        ),
        compiler_params=pltpu.CompilerParams(
            dimension_semantics=("parallel", "arbitrary"),
            vmem_limit_bytes=VMEM_LIMIT,
        ),
    )(patches, w, b.reshape(1, c_pad))
    return out[:M]


# ------------------- up-conv (4-phase ConvT) + BN statistics ----------------- #
# Each grid step computes the 4 output-phase GEMMs for one row tile and emits
# per-tile per-channel partial sum / sum-of-squares (padded rows masked out).

def _up_gemm_bn_kernel(p_ref, w_ref, b_ref, y_ref, psum_ref, psq_ref, *, m_valid):
    tile_m = p_ref.shape[1]
    c_pad = y_ref.shape[2]
    rows = pl.program_id(0) * tile_m + lax.broadcasted_iota(jnp.int32, (tile_m, 1), 0)
    valid = rows < m_valid

    b = b_ref[...]                                      # (1, c_pad) f32
    s = jnp.zeros((1, c_pad), jnp.float32)
    sq = jnp.zeros((1, c_pad), jnp.float32)
    for ph in range(4):                                 # 4 output phases of the ConvT
        y = jnp.dot(p_ref[ph], w_ref[ph], preferred_element_type=jnp.float32) + b
        y_ref[ph] = y
        ym = jnp.where(valid, y, 0.0)
        s = s + jnp.sum(ym, axis=0, keepdims=True)
        sq = sq + jnp.sum(ym * ym, axis=0, keepdims=True)
    psum_ref[...] = jnp.broadcast_to(s[:, None, :], (1, 8, c_pad))
    psq_ref[...] = jnp.broadcast_to(sq[:, None, :], (1, 8, c_pad))


def up_conv_with_stats(p_stack, w_stack, b, *, tile_m_pref=256):
    """p_stack (4, M, K) bf16, w_stack (4, K, c_pad) bf16, b (c_pad,) f32."""
    _, M, K = p_stack.shape
    c_pad = w_stack.shape[2]
    m_pad, tile_m = _choose_row_tiling(M, tile_m_pref)
    if m_pad != M:
        p_stack = jnp.pad(p_stack, ((0, 0), (0, m_pad - M), (0, 0)))
    grid_m = m_pad // tile_m

    y, psum, psq = pl.pallas_call(
        functools.partial(_up_gemm_bn_kernel, m_valid=M),
        out_shape=(
            jax.ShapeDtypeStruct((4, m_pad, c_pad), jnp.float32),
            jax.ShapeDtypeStruct((grid_m, 8, c_pad), jnp.float32),
            jax.ShapeDtypeStruct((grid_m, 8, c_pad), jnp.float32),
        ),
        grid_spec=pltpu.PrefetchScalarGridSpec(
            num_scalar_prefetch=0,
            grid=(grid_m,),
            in_specs=[
                pl.BlockSpec((4, tile_m, K), lambda i: (0, i, 0)),
                pl.BlockSpec((4, K, c_pad), lambda i: (0, 0, 0)),
                pl.BlockSpec((1, c_pad), lambda i: (0, 0)),
            ],
            out_specs=(
                pl.BlockSpec((4, tile_m, c_pad), lambda i: (0, i, 0)),
                pl.BlockSpec((1, 8, c_pad), lambda i: (i, 0, 0)),
                pl.BlockSpec((1, 8, c_pad), lambda i: (i, 0, 0)),
            ),
        ),
        compiler_params=pltpu.CompilerParams(
            dimension_semantics=("parallel",),
            vmem_limit_bytes=VMEM_LIMIT,
        ),
    )(p_stack, w_stack, b.reshape(1, c_pad))

    count = jnp.float32(4 * M)                          # N*H*W elements per channel
    ch_sum = psum[:, 0, :].sum(axis=0)
    ch_sq = psq[:, 0, :].sum(axis=0)
    mean = ch_sum / count
    var = ch_sq / count - mean * mean                   # biased (training-mode) variance
    return y, mean, var, tile_m


# ----------------------------- BN affine kernel ----------------------------- #

def _bn_apply_kernel(y_ref, scale_ref, shift_ref, o_ref):
    o_ref[...] = y_ref[...] * scale_ref[...] + shift_ref[...]


def bn_apply(y, scale, shift, tile_m):
    """y (4, m_pad, c_pad) f32 -> y*scale + shift, lane-dense (c_pad=128k) tiles."""
    _, m_pad, c_pad = y.shape
    return pl.pallas_call(
        _bn_apply_kernel,
        out_shape=jax.ShapeDtypeStruct((4, m_pad, c_pad), jnp.float32),
        grid_spec=pltpu.PrefetchScalarGridSpec(
            num_scalar_prefetch=0,
            grid=(m_pad // tile_m,),
            in_specs=[
                pl.BlockSpec((4, tile_m, c_pad), lambda i: (0, i, 0)),
                pl.BlockSpec((1, c_pad), lambda i: (0, 0)),
                pl.BlockSpec((1, c_pad), lambda i: (0, 0)),
            ],
            out_specs=pl.BlockSpec((4, tile_m, c_pad), lambda i: (0, i, 0)),
        ),
        compiler_params=pltpu.CompilerParams(
            dimension_semantics=("parallel",),
            vmem_limit_bytes=VMEM_LIMIT,
        ),
    )(y, scale.reshape(1, c_pad), shift.reshape(1, c_pad))


# ------------------------------- JAX glue ----------------------------------- #

def _im2col_k4_s2_p1(x_nhwc):
    """Patches for a 4x4 / stride-2 / pad-1 conv.  Returns (N*Ho*Wo, 16*C)."""
    N, H, W, C = x_nhwc.shape
    Ho, Wo = H // 2, W // 2
    xp = jnp.pad(x_nhwc, ((0, 0), (1, 1), (1, 1), (0, 0)))
    taps = []
    for kh in range(4):
        for kw in range(4):
            taps.append(xp[:, kh::2, kw::2, :][:, :Ho, :Wo, :])
    patches = jnp.stack(taps, axis=3)                   # (N, Ho, Wo, 16, C)
    return patches.reshape(N * Ho * Wo, 16 * C), (N, Ho, Wo)


# For ConvT(k=4,s=2,p=1): output row y = 2p + ry gets taps from d rows {p-1,p} (ry=0)
# or {p,p+1} (ry=1), with kernel indices {3,1} / {2,0}.  (offset into 1-padded d, k idx):
_ROW_TAPS = ([(0, 3), (1, 1)], [(1, 2), (2, 0)])


def _convT_phase_patches(d_nhwc):
    """Phase-decomposed im2col for ConvT(k=4,s=2,p=1): 4 dense 2x2 GEMM problems."""
    N, Ho, Wo, C = d_nhwc.shape
    dp = jnp.pad(d_nhwc, ((0, 0), (1, 1), (1, 1), (0, 0)))
    phases = []
    for ry in range(2):
        for rx in range(2):
            taps = []
            for (ai, _) in _ROW_TAPS[ry]:
                for (aj, _) in _ROW_TAPS[rx]:
                    taps.append(dp[:, ai:ai + Ho, aj:aj + Wo, :])
            phases.append(jnp.concatenate(taps, axis=-1).reshape(N * Ho * Wo, 4 * C))
    return jnp.stack(phases, axis=0)                    # (4, N*Ho*Wo, 4*C)


def _convT_phase_weights(w_up, c_pad):
    """(inner, outer, 4, 4) ConvT weight -> (4, 4*inner, c_pad) phase GEMM weights."""
    outer = w_up.shape[1]
    mats = []
    for ry in range(2):
        for rx in range(2):
            blocks = []
            for (_, khv) in _ROW_TAPS[ry]:
                for (_, kwv) in _ROW_TAPS[rx]:
                    blocks.append(w_up[:, :, khv, kwv])          # (inner, outer)
            m = jnp.concatenate(blocks, axis=0)                  # (4*inner, outer)
            mats.append(jnp.pad(m, ((0, 0), (0, c_pad - outer))))
    return jnp.stack(mats, axis=0)


# ------------------------------ forward pass -------------------------------- #

def unet_innermost_forward(x_nchw, params):
    w_down, b_down = params["w_down"], params["b_down"]   # (inner, outer, 4, 4), (inner,)
    w_up, b_up = params["w_up"], params["b_up"]           # (inner, outer, 4, 4), (outer,)
    gamma, beta = params["gamma"], params["beta"]          # (outer,), (outer,)

    N, c_outer, H, W = x_nchw.shape
    inner_nc = w_down.shape[0]
    c_pad_down = _round_up(inner_nc, LANE)
    c_pad_up = _round_up(c_outer, LANE)

    x_nhwc = jnp.transpose(x_nchw, (0, 2, 3, 1))

    # down: LeakyReLU(0.2) -> Conv2d(outer->inner, 4, 2, 1); uprelu (ReLU) fused as post-act.
    # TODO(synk): do the im2col gather inside the kernel (shifted in-kernel dots) to avoid
    # materializing the expanded patch matrix in HBM.
    p_down, (_, Ho, Wo) = _im2col_k4_s2_p1(x_nhwc)
    p_down = p_down.astype(jnp.bfloat16)
    wg_down = jnp.transpose(w_down, (2, 3, 1, 0)).reshape(16 * c_outer, inner_nc)
    wg_down = jnp.pad(wg_down, ((0, 0), (0, c_pad_down - inner_nc))).astype(jnp.bfloat16)
    bg_down = jnp.pad(b_down, (0, c_pad_down - inner_nc)).astype(jnp.float32)
    d = down_conv(p_down, wg_down, bg_down)                 # (N*Ho*Wo, c_pad_down) f32
    d_nhwc = d[:, :inner_nc].reshape(N, Ho, Wo, inner_nc)

    # up: ConvTranspose2d(inner->outer, 4, 2, 1) as 4 dense phase GEMMs, with the BN
    # batch statistics (per-channel sum / sum-of-squares) fused into the same pass.
    p_up = _convT_phase_patches(d_nhwc.astype(jnp.bfloat16))          # (4, M, 4*inner)
    wg_up = _convT_phase_weights(w_up, c_pad_up).astype(jnp.bfloat16)  # (4, 4*inner, c_pad)
    bg_up = jnp.pad(b_up, (0, c_pad_up - c_outer)).astype(jnp.float32)
    y, mean, var, tile_m = up_conv_with_stats(p_up, wg_up, bg_up)

    # BatchNorm2d(outer, affine=True), training-mode batch statistics.
    gamma_p = jnp.pad(gamma, (0, c_pad_up - c_outer))
    beta_p = jnp.pad(beta, (0, c_pad_up - c_outer))
    scale = gamma_p * lax.rsqrt(var + BN_EPS)
    shift = beta_p - mean * scale
    yb = bn_apply(y, scale, shift, tile_m)                  # (4, m_pad, c_pad_up)

    # interleave the 4 output phases -> NHWC -> NCHW, skip connection concat.
    # TODO(synk): if the consumer accepts NHWC, skip this transpose and concat on the
    # last axis (or write directly into a preallocated concat buffer via input_output_aliases).
    M = N * Ho * Wo
    yb = yb[:, :M, :c_outer].reshape(2, 2, N, Ho, Wo, c_outer)
    y_nhwc = jnp.transpose(yb, (2, 3, 0, 4, 1, 5)).reshape(N, 2 * Ho, 2 * Wo, c_outer)
    y_nchw = jnp.transpose(y_nhwc, (0, 3, 1, 2))
    return jnp.concatenate([y_nchw, x_nchw], axis=1)


# ------------------------- pure-JAX reference check ------------------------- #

def reference_forward(x, params):
    w_down, b_down = params["w_down"], params["b_down"]
    w_up, b_up = params["w_up"], params["b_up"]
    gamma, beta = params["gamma"], params["beta"]

    lx = jnp.where(x > 0, x, NEG_SLOPE * x)
    d = lax.conv_general_dilated(
        lx, w_down, (2, 2), ((1, 1), (1, 1)),
        dimension_numbers=("NCHW", "OIHW", "NCHW"),
        precision=lax.Precision.HIGHEST) + b_down[None, :, None, None]
    d = jnp.maximum(d, 0.0)

    w_conv = jnp.transpose(w_up, (1, 0, 2, 3))[:, :, ::-1, ::-1]
    u = lax.conv_general_dilated(
        d, w_conv, (1, 1), ((2, 2), (2, 2)), lhs_dilation=(2, 2),
        dimension_numbers=("NCHW", "OIHW", "NCHW"),
        precision=lax.Precision.HIGHEST) + b_up[None, :, None, None]

    mean = u.mean((0, 2, 3), keepdims=True)
    var = ((u - mean) ** 2).mean((0, 2, 3), keepdims=True)
    bn = (u - mean) / jnp.sqrt(var + BN_EPS) * gamma[None, :, None, None] \
         + beta[None, :, None, None]
    return jnp.concatenate([bn, x], axis=1)


# ----------------------------------- main ------------------------------------ #

if __name__ == "__main__":
    key = jax.random.PRNGKey(0)
    N, outer_nc, inner_nc, H, W = 2, 4, 8, 16, 16
    ks = jax.random.split(key, 7)

    x = jax.random.normal(ks[0], (N, outer_nc, H, W), jnp.float32)
    params = dict(
        # Conv2d(outer_nc, inner_nc, 4, 2, 1): weight (out, in, kH, kW)
        w_down=jax.random.normal(ks[1], (inner_nc, outer_nc, 4, 4), jnp.float32)
               / jnp.sqrt(16.0 * outer_nc),
        b_down=jax.random.normal(ks[2], (inner_nc,), jnp.float32) * 0.1,
        # ConvTranspose2d(inner_nc, outer_nc, 4, 2, 1): weight (in, out, kH, kW)
        w_up=jax.random.normal(ks[3], (inner_nc, outer_nc, 4, 4), jnp.float32)
             / jnp.sqrt(16.0 * inner_nc),
        b_up=jax.random.normal(ks[4], (outer_nc,), jnp.float32) * 0.1,
        # BatchNorm2d(outer_nc, affine=True)
        gamma=1.0 + 0.1 * jax.random.normal(ks[5], (outer_nc,), jnp.float32),
        beta=0.1 * jax.random.normal(ks[6], (outer_nc,), jnp.float32),
    )

    out = jax.jit(unet_innermost_forward)(x, params)
    out = jax.block_until_ready(out)
    assert out.shape == (N, 2 * outer_nc, H, W), out.shape

    # f32 reference; tolerance sized for the bf16 MXU operands used by the kernels.
    ref = reference_forward(x, params)
    rel = float(jnp.linalg.norm(out - ref) / jnp.linalg.norm(ref))
    max_err = float(jnp.max(jnp.abs(out - ref)))
    assert rel < 3e-2 and max_err < 0.25, f"rel L2 err = {rel}, max abs err = {max_err}"

    print("KERNEL_OK")
</pallas_src>

<mosaic_0001>
module attributes {stable_mosaic.version = 11 : i64} {
  func.func @_down_gemm_kernel(%arg0: i32, %arg1: i32, %arg2: memref<128x64xbf16, #tpu.memory_space<vmem>>, %arg3: memref<64x128xbf16, #tpu.memory_space<vmem>>, %arg4: memref<1x128xf32, #tpu.memory_space<vmem>>, %arg5: memref<128x128xf32, #tpu.memory_space<vmem>>, %arg6: memref<128x128xf32, #tpu.memory_space<vmem>>) attributes {dimension_semantics = [#tpu.dimension_semantics<parallel>, #tpu.dimension_semantics<arbitrary>], iteration_bounds = array<i64: 1, 1>, scalar_prefetch = 0 : i64, scratch_operands = 1 : i64, tpu.core_type = #tpu.core_type<tc>, window_params = [{transform_indices = @transform_0, window_bounds = array<i64: 128, 64>}, {transform_indices = @transform_1, window_bounds = array<i64: 64, 128>}, {pipeline_mode = #tpu.pipeline_mode<synchronous>, transform_indices = @transform_2, window_bounds = array<i64: 1, 128>}, {transform_indices = @transform_3, window_bounds = array<i64: 128, 128>}]} {
    %c0_i32 = arith.constant 0 : i32
    %0 = arith.cmpi eq, %arg1, %c0_i32 : i32
    %1 = arith.extui %0 : i1 to i32
    %c0_i32_0 = arith.constant 0 : i32
    %2 = arith.cmpi ne, %1, %c0_i32_0 : i32
    scf.if %2 {
      %cst_12 = arith.constant 0.000000e+00 : f32
      %17 = vector.broadcast %cst_12 : f32 to vector<128x128xf32>
      %c0_13 = arith.constant 0 : index
      %c0_14 = arith.constant 0 : index
      %18 = vector.load %arg6[%c0_13, %c0_14] : memref<128x128xf32, #tpu.memory_space<vmem>>, vector<128x128xf32>
      tpu.vector_store %arg6[%c0_13, %c0_14], %17 {strides = array<i32>} : memref<128x128xf32, #tpu.memory_space<vmem>>, vector<128x128xf32>,
    } else {
    }
    %c0 = arith.constant 0 : index
    %c0_1 = arith.constant 0 : index
    %3 = vector.load %arg2[%c0, %c0_1] : memref<128x64xbf16, #tpu.memory_space<vmem>>, vector<128x64xbf16>
    %cst = arith.constant 0.000000e+00 : bf16
    %4 = vector.broadcast %cst : bf16 to vector<128x64xbf16>
    %5 = arith.cmpf ogt, %3, %4 : vector<128x64xbf16>
    %cst_2 = arith.constant 2.001950e-01 : bf16
    %6 = vector.broadcast %cst_2 : bf16 to vector<128x64xbf16>
    %7 = arith.mulf %3, %6 : vector<128x64xbf16>
    %8 = arith.select %5, %3, %7 : vector<128x64xi1>, vector<128x64xbf16>
    %c0_3 = arith.constant 0 : index
    %c0_4 = arith.constant 0 : index
    %9 = vector.load %arg6[%c0_3, %c0_4] : memref<128x128xf32, #tpu.memory_space<vmem>>, vector<128x128xf32>
    %c0_5 = arith.constant 0 : index
    %c0_6 = arith.constant 0 : index
    %10 = vector.load %arg3[%c0_5, %c0_6] : memref<64x128xbf16, #tpu.memory_space<vmem>>, vector<64x128xbf16>
    %cst_7 = arith.constant dense<0.000000e+00> : vector<128x128xf32>
    %11 = tpu.matmul %8, %10, %cst_7 {dimension_numbers = #tpu.dot_dimension_numbers<[1], [0], [0], [1], [0, 0, 1, 1], [], []>} : vector<128x64xbf16>, vector<64x128xbf16>, vector<128x128xf32> -> vector<128x128xf32>
    %12 = arith.addf %9, %11 : vector<128x128xf32>
    %c0_8 = arith.constant 0 : index
    %c0_9 = arith.constant 0 : index
    %13 = vector.load %arg6[%c0_8, %c0_9] : memref<128x128xf32, #tpu.memory_space<vmem>>, vector<128x128xf32>
    tpu.vector_store %arg6[%c0_8, %c0_9], %12 {strides = array<i32>} : memref<128x128xf32, #tpu.memory_space<vmem>>, vector<128x128xf32>,
    %c0_i32_10 = arith.constant 0 : i32
    %14 = arith.cmpi eq, %arg1, %c0_i32_10 : i32
    %15 = arith.extui %14 : i1 to i32
    %c0_i32_11 = arith.constant 0 : i32
    %16 = arith.cmpi ne, %15, %c0_i32_11 : i32
    scf.if %16 {
      %c0_12 = arith.constant 0 : index
      %c0_13 = arith.constant 0 : index
      %17 = vector.load %arg6[%c0_12, %c0_13] : memref<128x128xf32, #tpu.memory_space<vmem>>, vector<128x128xf32>
      %c0_14 = arith.constant 0 : index
      %c0_15 = arith.constant 0 : index
      %18 = vector.load %arg4[%c0_14, %c0_15] : memref<1x128xf32, #tpu.memory_space<vmem>>, vector<1x128xf32>
      %19 = vector.broadcast %18 : vector<1x128xf32> to vector<128x128xf32>
      %20 = arith.addf %17, %19 : vector<128x128xf32>
      %cst_16 = arith.constant 0.000000e+00 : f32
      %21 = vector.broadcast %cst_16 : f32 to vector<128x128xf32>
      %22 = arith.maximumf %20, %21 : vector<128x128xf32>
      %c0_17 = arith.constant 0 : index
      %c0_18 = arith.constant 0 : index
      %23 = vector.load %arg5[%c0_17, %c0_18] : memref<128x128xf32, #tpu.memory_space<vmem>>, vector<128x128xf32>
      tpu.vector_store %arg5[%c0_17, %c0_18], %22 {strides = array<i32>} : memref<128x128xf32, #tpu.memory_space<vmem>>, vector<128x128xf32>,
    } else {
    }
    return
  }
  func.func @transform_0(%arg0: i32, %arg1: i32) -> (i32, i32) {
    %c0_i32 = arith.constant 0 : i32
    return %arg0, %arg1 : i32, i32
  }
  func.func @transform_1(%arg0: i32, %arg1: i32) -> (i32, i32) {
    %c0_i32 = arith.constant 0 : i32
    %c0_i32_0 = arith.constant 0 : i32
    return %arg1, %c0_i32 : i32, i32
  }
  func.func @transform_2(%arg0: i32, %arg1: i32) -> (i32, i32) {
    %c0_i32 = arith.constant 0 : i32
    %c0_i32_0 = arith.constant 0 : i32
    %c0_i32_1 = arith.constant 0 : i32
    return %c0_i32, %c0_i32_0 : i32, i32
  }
  func.func @transform_3(%arg0: i32, %arg1: i32) -> (i32, i32) {
    %c0_i32 = arith.constant 0 : i32
    %c0_i32_0 = arith.constant 0 : i32
    return %arg0, %c0_i32 : i32, i32
  }
}

module attributes {stable_mosaic.version = 11 : i64} {
  func.func @_up_gemm_bn_kernel(%arg0: i32, %arg1: memref<4x128x32xbf16, #tpu.memory_space<vmem>>, %arg2: memref<4x32x128xbf16, #tpu.memory_space<vmem>>, %arg3: memref<1x128xf32, #tpu.memory_space<vmem>>, %arg4: memref<4x128x128xf32, #tpu.memory_space<vmem>>, %arg5: memref<1x8x128xf32, #tpu.memory_space<vmem>>, %arg6: memref<1x8x128xf32, #tpu.memory_space<vmem>>) attributes {dimension_semantics = [#tpu.dimension_semantics<parallel>], iteration_bounds = array<i64: 1>, scalar_prefetch = 0 : i64, scratch_operands = 0 : i64, tpu.core_type = #tpu.core_type<tc>, window_params = [{transform_indices = @transform_0, window_bounds = array<i64: 4, 128, 32>}, {pipeline_mode = #tpu.pipeline_mode<synchronous>, transform_indices = @transform_1, window_bounds = array<i64: 4, 32, 128>}, {pipeline_mode = #tpu.pipeline_mode<synchronous>, transform_indices = @transform_2, window_bounds = array<i64: 1, 128>}, {transform_indices = @transform_3, window_bounds = array<i64: 4, 128, 128>}, {transform_indices = @transform_4, window_bounds = array<i64: 1, 8, 128>}, {transform_indices = @transform_5, window_bounds = array<i64: 1, 8, 128>}]} {
    %c128_i32 = arith.constant 128 : i32
    %0 = arith.muli %arg0, %c128_i32 : i32
    %1 = tpu.iota {dimensions = array<i32: 0>} : vector<128x1xi32>
    %2 = vector.broadcast %0 : i32 to vector<128x1xi32>
    %3 = arith.addi %2, %1 : vector<128x1xi32>
    %c128_i32_0 = arith.constant 128 : i32
    %4 = vector.broadcast %c128_i32_0 : i32 to vector<128x1xi32>
    %5 = arith.cmpi slt, %3, %4 : vector<128x1xi32>
    %c0 = arith.constant 0 : index
    %c0_1 = arith.constant 0 : index
    %6 = vector.load %arg3[%c0, %c0_1] : memref<1x128xf32, #tpu.memory_space<vmem>>, vector<1x128xf32>
    %cst = arith.constant 0.000000e+00 : f32
    %7 = vector.broadcast %cst : f32 to vector<1x128xf32>
    %cst_2 = arith.constant 0.000000e+00 : f32
    %8 = vector.broadcast %cst_2 : f32 to vector<1x128xf32>
    %c0_3 = arith.constant 0 : index
    %c0_4 = arith.constant 0 : index
    %c0_5 = arith.constant 0 : index
    %9 = vector.load %arg1[%c0_3, %c0_4, %c0_5] : memref<4x128x32xbf16, #tpu.memory_space<vmem>>, vector<1x128x32xbf16>
    %10 = vector.shape_cast %9 : vector<1x128x32xbf16> to vector<128x32xbf16>
    %c0_6 = arith.constant 0 : index
    %c0_7 = arith.constant 0 : index
    %c0_8 = arith.constant 0 : index
    %11 = vector.load %arg2[%c0_6, %c0_7, %c0_8] : memref<4x32x128xbf16, #tpu.memory_space<vmem>>, vector<1x32x128xbf16>
    %12 = vector.shape_cast %11 : vector<1x32x128xbf16> to vector<32x128xbf16>
    %cst_9 = arith.constant dense<0.000000e+00> : vector<128x128xf32>
    %13 = tpu.matmul %10, %12, %cst_9 {dimension_numbers = #tpu.dot_dimension_numbers<[1], [0], [0], [1], [0, 0, 1, 1], [], []>} : vector<128x32xbf16>, vector<32x128xbf16>, vector<128x128xf32> -> vector<128x128xf32>
    %14 = vector.broadcast %6 : vector<1x128xf32> to vector<128x128xf32>
    %15 = arith.addf %13, %14 : vector<128x128xf32>
    %c0_10 = arith.constant 0 : index
    %c0_11 = arith.constant 0 : index
    %c0_12 = arith.constant 0 : index
    %16 = vector.load %arg4[%c0_10, %c0_11, %c0_12] : memref<4x128x128xf32, #tpu.memory_space<vmem>>, vector<1x128x128xf32>
    %17 = vector.shape_cast %16 : vector<1x128x128xf32> to vector<128x128xf32>
    %18 = vector.shape_cast %15 : vector<128x128xf32> to vector<1x128x128xf32>
    tpu.vector_store %arg4[%c0_10, %c0_11, %c0_12], %18 {strides = array<i32>} : memref<4x128x128xf32, #tpu.memory_space<vmem>>, vector<1x128x128xf32>,
    %cst_13 = arith.constant 0.000000e+00 : f32
    %19 = vector.shape_cast %5 : vector<128x1xi1> to vector<128x1xi1>
    %20 = vector.broadcast %19 : vector<128x1xi1> to vector<128x128xi1>
    %21 = vector.broadcast %cst_13 : f32 to vector<128x128xf32>
    %22 = arith.select %20, %15, %21 : vector<128x128xi1>, vector<128x128xf32>
    %cst_14 = arith.constant dense<0.000000e+00> : vector<128xf32>
    %23 = vector.multi_reduction <add>, %22, %cst_14 [0] : vector<128x128xf32> to vector<128xf32>
    %24 = vector.shape_cast %23 : vector<128xf32> to vector<1x128xf32>
    %25 = arith.addf %7, %24 : vector<1x128xf32>
    %26 = arith.mulf %22, %22 : vector<128x128xf32>
    %cst_15 = arith.constant dense<0.000000e+00> : vector<128xf32>
    %27 = vector.multi_reduction <add>, %26, %cst_15 [0] : vector<128x128xf32> to vector<128xf32>
    %28 = vector.shape_cast %27 : vector<128xf32> to vector<1x128xf32>
    %29 = arith.addf %8, %28 : vector<1x128xf32>
    %c1 = arith.constant 1 : index
    %c0_16 = arith.constant 0 : index
    %c0_17 = arith.constant 0 : index
    %30 = vector.load %arg1[%c1, %c0_16, %c0_17] : memref<4x128x32xbf16, #tpu.memory_space<vmem>>, vector<1x128x32xbf16>
    %31 = vector.shape_cast %30 : vector<1x128x32xbf16> to vector<128x32xbf16>
    %c1_18 = arith.constant 1 : index
    %c0_19 = arith.constant 0 : index
    %c0_20 = arith.constant 0 : index
    %32 = vector.load %arg2[%c1_18, %c0_19, %c0_20] : memref<4x32x128xbf16, #tpu.memory_space<vmem>>, vector<1x32x128xbf16>
    %33 = vector.shape_cast %32 : vector<1x32x128xbf16> to vector<32x128xbf16>
    %cst_21 = arith.constant dense<0.000000e+00> : vector<128x128xf32>
    %34 = tpu.matmul %31, %33, %cst_21 {dimension_numbers = #tpu.dot_dimension_numbers<[1], [0], [0], [1], [0, 0, 1, 1], [], []>} : vector<128x32xbf16>, vector<32x128xbf16>, vector<128x128xf32> -> vector<128x128xf32>
    %35 = vector.broadcast %6 : vector<1x128xf32> to vector<128x128xf32>
    %36 = arith.addf %34, %35 : vector<128x128xf32>
    %c1_22 = arith.constant 1 : index
    %c0_23 = arith.constant 0 : index
    %c0_24 = arith.constant 0 : index
    %37 = vector.load %arg4[%c1_22, %c0_23, %c0_24] : memref<4x128x128xf32, #tpu.memory_space<vmem>>, vector<1x128x128xf32>
    %38 = vector.shape_cast %37 : vector<1x128x128xf32> to vector<128x128xf32>
    %39 = vector.shape_cast %36 : vector<128x128xf32> to vector<1x128x128xf32>
    tpu.vector_store %arg4[%c1_22, %c0_23, %c0_24], %39 {strides = array<i32>} : memref<4x128x128xf32, #tpu.memory_space<vmem>>, vector<1x128x128xf32>,
    %cst_25 = arith.constant 0.000000e+00 : f32
    %40 = vector.shape_cast %5 : vector<128x1xi1> to vector<128x1xi1>
    %41 = vector.broadcast %40 : vector<128x1xi1> to vector<128x128xi1>
    %42 = vector.broadcast %cst_25 : f32 to vector<128x128xf32>
    %43 = arith.select %41, %36, %42 : vector<128x128xi1>, vector<128x128xf32>
    %cst_26 = arith.constant dense<0.000000e+00> : vector<128xf32>
    %44 = vector.multi_reduction <add>, %43, %cst_26 [0] : vector<128x128xf32> to vector<128xf32>
    %45 = vector.shape_cast %44 : vector<128xf32> to vector<1x128xf32>
    %46 = arith.addf %25, %45 : vector<1x128xf32>
    %47 = arith.mulf %43, %43 : vector<128x128xf32>
    %cst_27 = arith.constant dense<0.000000e+00> : vector<128xf32>
    %48 = vector.multi_reduction <add>, %47, %cst_27 [0] : vector<128x128xf32> to vector<128xf32>
    %49 = vector.shape_cast %48 : vector<128xf32> to vector<1x128xf32>
    %50 = arith.addf %29, %49 : vector<1x128xf32>
    %c2 = arith.constant 2 : index
    %c0_28 = arith.constant 0 : index
    %c0_29 = arith.constant 0 : index
    %51 = vector.load %arg1[%c2, %c0_28, %c0_29] : memref<4x128x32xbf16, #tpu.memory_space<vmem>>, vector<1x128x32xbf16>
    %52 = vector.shape_cast %51 : vector<1x128x32xbf16> to vector<128x32xbf16>
    %c2_30 = arith.constant 2 : index
    %c0_31 = arith.constant 0 : index
    %c0_32 = arith.constant 0 : index
    %53 = vector.load %arg2[%c2_30, %c0_31, %c0_32] : memref<4x32x128xbf16, #tpu.memory_space<vmem>>, vector<1x32x128xbf16>
    %54 = vector.shape_cast %53 : vector<1x32x128xbf16> to vector<32x128xbf16>
    %cst_33 = arith.constant dense<0.000000e+00> : vector<128x128xf32>
    %55 = tpu.matmul %52, %54, %cst_33 {dimension_numbers = #tpu.dot_dimension_numbers<[1], [0], [0], [1], [0, 0, 1, 1], [], []>} : vector<128x32xbf16>, vector<32x128xbf16>, vector<128x128xf32> -> vector<128x128xf32>
    %56 = vector.broadcast %6 : vector<1x128xf32> to vector<128x128xf32>
    %57 = arith.addf %55, %56 : vector<128x128xf32>
    %c2_34 = arith.constant 2 : index
    %c0_35 = arith.constant 0 : index
    %c0_36 = arith.constant 0 : index
    %58 = vector.load %arg4[%c2_34, %c0_35, %c0_36] : memref<4x128x128xf32, #tpu.memory_space<vmem>>, vector<1x128x128xf32>
    %59 = vector.shape_cast %58 : vector<1x128x128xf32> to vector<128x128xf32>
    %60 = vector.shape_cast %57 : vector<128x128xf32> to vector<1x128x128xf32>
    tpu.vector_store %arg4[%c2_34, %c0_35, %c0_36], %60 {strides = array<i32>} : memref<4x128x128xf32, #tpu.memory_space<vmem>>, vector<1x128x128xf32>,
    %cst_37 = arith.constant 0.000000e+00 : f32
    %61 = vector.shape_cast %5 : vector<128x1xi1> to vector<128x1xi1>
    %62 = vector.broadcast %61 : vector<128x1xi1> to vector<128x128xi1>
    %63 = vector.broadcast %cst_37 : f32 to vector<128x128xf32>
    %64 = arith.select %62, %57, %63 : vector<128x128xi1>, vector<128x128xf32>
    %cst_38 = arith.constant dense<0.000000e+00> : vector<128xf32>
    %65 = vector.multi_reduction <add>, %64, %cst_38 [0] : vector<128x128xf32> to vector<128xf32>
    %66 = vector.shape_cast %65 : vector<128xf32> to vector<1x128xf32>
    %67 = arith.addf %46, %66 : vector<1x128xf32>
    %68 = arith.mulf %64, %64 : vector<128x128xf32>
    %cst_39 = arith.constant dense<0.000000e+00> : vector<128xf32>
    %69 = vector.multi_reduction <add>, %68, %cst_39 [0] : vector<128x128xf32> to vector<128xf32>
    %70 = vector.shape_cast %69 : vector<128xf32> to vector<1x128xf32>
    %71 = arith.addf %50, %70 : vector<1x128xf32>
    %c3 = arith.constant 3 : index
    %c0_40 = arith.constant 0 : index
    %c0_41 = arith.constant 0 : index
    %72 = vector.load %arg1[%c3, %c0_40, %c0_41] : memref<4x128x32xbf16, #tpu.memory_space<vmem>>, vector<1x128x32xbf16>
    %73 = vector.shape_cast %72 : vector<1x128x32xbf16> to vector<128x32xbf16>
    %c3_42 = arith.constant 3 : index
    %c0_43 = arith.constant 0 : index
    %c0_44 = arith.constant 0 : index
    %74 = vector.load %arg2[%c3_42, %c0_43, %c0_44] : memref<4x32x128xbf16, #tpu.memory_space<vmem>>, vector<1x32x128xbf16>
    %75 = vector.shape_cast %74 : vector<1x32x128xbf16> to vector<32x128xbf16>
    %cst_45 = arith.constant dense<0.000000e+00> : vector<128x128xf32>
    %76 = tpu.matmul %73, %75, %cst_45 {dimension_numbers = #tpu.dot_dimension_numbers<[1], [0], [0], [1], [0, 0, 1, 1], [], []>} : vector<128x32xbf16>, vector<32x128xbf16>, vector<128x128xf32> -> vector<128x128xf32>
    %77 = vector.broadcast %6 : vector<1x128xf32> to vector<128x128xf32>
    %78 = arith.addf %76, %77 : vector<128x128xf32>
    %c3_46 = arith.constant 3 : index
    %c0_47 = arith.constant 0 : index
    %c0_48 = arith.constant 0 : index
    %79 = vector.load %arg4[%c3_46, %c0_47, %c0_48] : memref<4x128x128xf32, #tpu.memory_space<vmem>>, vector<1x128x128xf32>
    %80 = vector.shape_cast %79 : vector<1x128x128xf32> to vector<128x128xf32>
    %81 = vector.shape_cast %78 : vector<128x128xf32> to vector<1x128x128xf32>
    tpu.vector_store %arg4[%c3_46, %c0_47, %c0_48], %81 {strides = array<i32>} : memref<4x128x128xf32, #tpu.memory_space<vmem>>, vector<1x128x128xf32>,
    %cst_49 = arith.constant 0.000000e+00 : f32
    %82 = vector.shape_cast %5 : vector<128x1xi1> to vector<128x1xi1>
    %83 = vector.broadcast %82 : vector<128x1xi1> to vector<128x128xi1>
    %84 = vector.broadcast %cst_49 : f32 to vector<128x128xf32>
    %85 = arith.select %83, %78, %84 : vector<128x128xi1>, vector<128x128xf32>
    %cst_50 = arith.constant dense<0.000000e+00> : vector<128xf32>
    %86 = vector.multi_reduction <add>, %85, %cst_50 [0] : vector<128x128xf32> to vector<128xf32>
    %87 = vector.shape_cast %86 : vector<128xf32> to vector<1x128xf32>
    %88 = arith.addf %67, %87 : vector<1x128xf32>
    %89 = arith.mulf %85, %85 : vector<128x128xf32>
    %cst_51 = arith.constant dense<0.000000e+00> : vector<128xf32>
    %90 = vector.multi_reduction <add>, %89, %cst_51 [0] : vector<128x128xf32> to vector<128xf32>
    %91 = vector.shape_cast %90 : vector<128xf32> to vector<1x128xf32>
    %92 = arith.addf %71, %91 : vector<1x128xf32>
    %93 = vector.shape_cast %88 : vector<1x128xf32> to vector<1x1x128xf32>
    %94 = vector.shape_cast %93 : vector<1x1x128xf32> to vector<1x1x128xf32>
    %95 = vector.broadcast %94 : vector<1x1x128xf32> to vector<1x8x128xf32>
    %c0_52 = arith.constant 0 : index
    %c0_53 = arith.constant 0 : index
    %c0_54 = arith.constant 0 : index
    %96 = vector.load %arg5[%c0_52, %c0_53, %c0_54] : memref<1x8x128xf32, #tpu.memory_space<vmem>>, vector<1x8x128xf32>
    tpu.vector_store %arg5[%c0_52, %c0_53, %c0_54], %95 {strides = array<i32>} : memref<1x8x128xf32, #tpu.memory_space<vmem>>, vector<1x8x128xf32>,
    %97 = vector.shape_cast %92 : vector<1x128xf32> to vector<1x1x128xf32>
    %98 = vector.shape_cast %97 : vector<1x1x128xf32> to vector<1x1x128xf32>
    %99 = vector.broadcast %98 : vector<1x1x128xf32> to vector<1x8x128xf32>
    %c0_55 = arith.constant 0 : index
    %c0_56 = arith.constant 0 : index
    %c0_57 = arith.constant 0 : index
    %100 = vector.load %arg6[%c0_55, %c0_56, %c0_57] : memref<1x8x128xf32, #tpu.memory_space<vmem>>, vector<1x8x128xf32>
    tpu.vector_store %arg6[%c0_55, %c0_56, %c0_57], %99 {strides = array<i32>} : memref<1x8x128xf32, #tpu.memory_space<vmem>>, vector<1x8x128xf32>,
    return
  }
  func.func @transform_0(%arg0: i32) -> (i32, i32, i32) {
    %c0_i32 = arith.constant 0 : i32
    %c0_i32_0 = arith.constant 0 : i32
    %c0_i32_1 = arith.constant 0 : i32
    return %c0_i32, %arg0, %c0_i32_0 : i32, i32, i32
  }
  func.func @transform_1(%arg0: i32) -> (i32, i32, i32) {
    %c0_i32 = arith.constant 0 : i32
    %c0_i32_0 = arith.constant 0 : i32
    %c0_i32_1 = arith.constant 0 : i32
    %c0_i32_2 = arith.constant 0 : i32
    return %c0_i32, %c0_i32_0, %c0_i32_1 : i32, i32, i32
  }
  func.func @transform_2(%arg0: i32) -> (i32, i32) {
    %c0_i32 = arith.constant 0 : i32
    %c0_i32_0 = arith.constant 0 : i32
    %c0_i32_1 = arith.constant 0 : i32
    return %c0_i32, %c0_i32_0 : i32, i32
  }
  func.func @transform_3(%arg0: i32) -> (i32, i32, i32) {
    %c0_i32 = arith.constant 0 : i32
    %c0_i32_0 = arith.constant 0 : i32
    %c0_i32_1 = arith.constant 0 : i32
    return %c0_i32, %arg0, %c0_i32_0 : i32, i32, i32
  }
  func.func @transform_4(%arg0: i32) -> (i32, i32, i32) {
    %c0_i32 = arith.constant 0 : i32
    %c0_i32_0 = arith.constant 0 : i32
    %c0_i32_1 = arith.constant 0 : i32
    return %arg0, %c0_i32, %c0_i32_0 : i32, i32, i32
  }
  func.func @transform_5(%arg0: i32) -> (i32, i32, i32) {
    %c0_i32 = arith.constant 0 : i32
    %c0_i32_0 = arith.constant 0 : i32
    %c0_i32_1 = arith.constant 0 : i32
    return %arg0, %c0_i32, %c0_i32_0 : i32, i32, i32
  }
}

module attributes {stable_mosaic.version = 11 : i64} {
  func.func @_bn_apply_kernel(%arg0: i32, %arg1: memref<4x128x128xf32, #tpu.memory_space<vmem>>, %arg2: memref<1x128xf32, #tpu.memory_space<vmem>>, %arg3: memref<1x128xf32, #tpu.memory_space<vmem>>, %arg4: memref<4x128x128xf32, #tpu.memory_space<vmem>>) attributes {dimension_semantics = [#tpu.dimension_semantics<parallel>], iteration_bounds = array<i64: 1>, scalar_prefetch = 0 : i64, scratch_operands = 0 : i64, tpu.core_type = #tpu.core_type<tc>, window_params = [{transform_indices = @transform_0, window_bounds = array<i64: 4, 128, 128>}, {pipeline_mode = #tpu.pipeline_mode<synchronous>, transform_indices = @transform_1, window_bounds = array<i64: 1, 128>}, {pipeline_mode = #tpu.pipeline_mode<synchronous>, transform_indices = @transform_2, window_bounds = array<i64: 1, 128>}, {transform_indices = @transform_3, window_bounds = array<i64: 4, 128, 128>}]} {
    %c0 = arith.constant 0 : index
    %c0_0 = arith.constant 0 : index
    %c0_1 = arith.constant 0 : index
    %0 = vector.load %arg1[%c0, %c0_0, %c0_1] : memref<4x128x128xf32, #tpu.memory_space<vmem>>, vector<4x128x128xf32>
    %c0_2 = arith.constant 0 : index
    %c0_3 = arith.constant 0 : index
    %1 = vector.load %arg2[%c0_2, %c0_3] : memref<1x128xf32, #tpu.memory_space<vmem>>, vector<1x128xf32>
    %2 = vector.shape_cast %1 : vector<1x128xf32> to vector<1x1x128xf32>
    %3 = vector.broadcast %2 : vector<1x1x128xf32> to vector<4x128x128xf32>
    %4 = arith.mulf %0, %3 : vector<4x128x128xf32>
    %c0_4 = arith.constant 0 : index
    %c0_5 = arith.constant 0 : index
    %5 = vector.load %arg3[%c0_4, %c0_5] : memref<1x128xf32, #tpu.memory_space<vmem>>, vector<1x128xf32>
    %6 = vector.shape_cast %5 : vector<1x128xf32> to vector<1x1x128xf32>
    %7 = vector.broadcast %6 : vector<1x1x128xf32> to vector<4x128x128xf32>
    %8 = arith.addf %4, %7 : vector<4x128x128xf32>
    %c0_6 = arith.constant 0 : index
    %c0_7 = arith.constant 0 : index
    %c0_8 = arith.constant 0 : index
    %9 = vector.load %arg4[%c0_6, %c0_7, %c0_8] : memref<4x128x128xf32, #tpu.memory_space<vmem>>, vector<4x128x128xf32>
    tpu.vector_store %arg4[%c0_6, %c0_7, %c0_8], %8 {strides = array<i32>} : memref<4x128x128xf32, #tpu.memory_space<vmem>>, vector<4x128x128xf32>,
    return
  }
  func.func @transform_0(%arg0: i32) -> (i32, i32, i32) {
    %c0_i32 = arith.constant 0 : i32
    %c0_i32_0 = arith.constant 0 : i32
    %c0_i32_1 = arith.constant 0 : i32
    return %c0_i32, %arg0, %c0_i32_0 : i32, i32, i32
  }
  func.func @transform_1(%arg0: i32) -> (i32, i32) {
    %c0_i32 = arith.constant 0 : i32
    %c0_i32_0 = arith.constant 0 : i32
    %c0_i32_1 = arith.constant 0 : i32
    return %c0_i32, %c0_i32_0 : i32, i32
  }
  func.func @transform_2(%arg0: i32) -> (i32, i32) {
    %c0_i32 = arith.constant 0 : i32
    %c0_i32_0 = arith.constant 0 : i32
    %c0_i32_1 = arith.constant 0 : i32
    return %c0_i32, %c0_i32_0 : i32, i32
  }
  func.func @transform_3(%arg0: i32) -> (i32, i32, i32) {
    %c0_i32 = arith.constant 0 : i32
    %c0_i32_0 = arith.constant 0 : i32
    %c0_i32_1 = arith.constant 0 : i32
    return %c0_i32, %arg0, %c0_i32_0 : i32, i32, i32
  }
}

</mosaic_0001>

<bundles_post_ra>
// kernel: unet_innermost_forward.3
= control target key start
LH: loop header
LB: loop body
LE: loop exit
PB: predicated region body
PF: predicated region fallthrough
CT: control target
= control target key end

     0   :  { %vm235_vm6 = vcmask 523264   ;;  %s763_s1 = inlined_call_operand.vmem [shape: bf16[64,128], index: 1, kind: input, shape index: {}]   ;;  %s764_s0 = inlined_call_operand.vmem [shape: bf16[128,64], index: 0, kind: input, shape index: {}]   ;;  %s765_s2 = inlined_call_operand.vmem [shape: f32[1,128], index: 2, kind: input, shape index: {}]   ;;  %s766_s3 = inlined_call_operand.vmem [shape: f32[128,128], index: 3, kind: output, shape index: {}]  }
   0x1   :  { %v443_v0 = vld [vmem:[%s763_s1 + $0x18] sm:$0xff]  ;;  %v442_v1 = vld [vmem:[%s763_s1 + $0x10] sm:$0xff]  ;;  %v35_v2 = vld [vmem:[%s764_s0] sm:$0xf] }
   0x2   :  { %v36_v3 = vld [vmem:[%s764_s0 + $0x4] sm:$0xf]  ;;  %264 = vmatpush.bf16.msra.mxu0 %v443_v0  ;;  %444 = vmatpush.bf16.msra.mxu1 %v443_v0  ;;  %v51_v4 = vunpack.c.l.bf16 %v35_v2  ;;  %v39_v6 = vld [vmem:[%s764_s0 + $0x10] sm:$0xf]  ;;  %v40_v7 = vld [vmem:[%s764_s0 + $0x14] sm:$0xf] }
   0x3   :  { %v52_v5 = vunpack.c.l.bf16 %v36_v3  ;;  %v498_v8 = vld [vmem:[%s764_s0 + $0x20] sm:$0xf]  ;;  %445 = vmatpush.bf16.msra.mxu2 %v443_v0  ;;  %446 = vmatpush.bf16.msra.mxu3 %v443_v0  ;;  %v55_v9 = vunpack.c.l.bf16 %v39_v6  ;;  %v56_v10 = vunpack.c.l.bf16 %v40_v7  ;;  %v44_v11 = vld [vmem:[%s764_s0 + $0x24] sm:$0xf]  ;;  %v515_v17 = vld [vmem:[%s764_s0 + $0x30] sm:$0xf] }
   0x4   :  { %v59_v12 = vunpack.c.l.bf16 %v498_v8  ;;  %vm504_vm0 = vcmp.gt.f32.partialorder %v51_v4, 0.0  ;;  %v83_v15 = vmul.f32 0.20019531, %v51_v4  ;;  %v441_v22 = vld [vmem:[%s763_s1 + $0x8] sm:$0xff]  ;;  %v60_v25 = vunpack.c.l.bf16 %v44_v11  ;;  %v48_v35 = vld [vmem:[%s764_s0 + $0x34] sm:$0xf]  ;;  %v440_v41 = vld [vmem:[%s763_s1] sm:$0xff] }
   0x5   :  { %vm508_vm1 = vcmp.gt.f32.partialorder %v52_v5, 0.0  ;;  %v84_v16 = vmul.f32 0.20019531, %v52_v5  ;;  %vm115_vm2 = vmpackc.low %vm504_vm0, %vm504_vm0  ;;  %vm520_vm3 = vcmp.gt.f32.partialorder %v55_v9, 0.0  ;;  %vm524_vm4 = vcmp.gt.f32.partialorder %v56_v10, 0.0  ;;  %v563_v40 = vld [vmem:[%s764_s0 + $0x8] sm:$0xf] }
   0x6   :  { %v87_v20 = vmul.f32 0.20019531, %v55_v9  ;;  %v88_v21 = vmul.f32 0.20019531, %v56_v10  ;;  %265 = vmatpush.bf16.msra.mxu0 %v442_v1  ;;  %447 = vmatpush.bf16.msra.mxu1 %v442_v1  ;;  %v99_v23 = vpack.c.bf16 %v83_v15, %v83_v15  ;;  %vm116_vm5 = vmpackc.low %vm508_vm1, %vm508_vm1  ;;  %vm534_vm7 = vcmp.gt.f32.partialorder %v59_v12, 0.0  ;;  %v38_v50 = vld [vmem:[%s764_s0 + $0xc] sm:$0xf] }
   0x7   :  { %v100_v24 = vpack.c.bf16 %v84_v16, %v84_v16  ;;  %448 = vmatpush.bf16.msra.mxu2 %v442_v1  ;;  %449 = vmatpush.bf16.msra.mxu3 %v442_v1  ;;  %vm119_vm8 = vmpackc.low %vm520_vm3, %vm520_vm3  ;;  %v91_v29 = vmul.f32 0.20019531, %v59_v12  ;;  %v63_v30 = vunpack.c.l.bf16 %v515_v17  ;;  %vm550_vm10 = vcmp.gt.f32.partialorder %v60_v25, 0.0  ;;  %v41_v55 = vld [vmem:[%s764_s0 + $0x18] sm:$0xf]  ;;  %v42_v56 = vld [vmem:[%s764_s0 + $0x1c] sm:$0xf] }
   0x8   :  { %v103_v27 = vpack.c.bf16 %v87_v20, %v87_v20  ;;  %v104_v28 = vpack.c.bf16 %v88_v21, %v88_v21  ;;  %v131_v31 = vsel %vm115_vm2, %v35_v2, %v99_v23  ;;  %vm120_vm9 = vmpackc.low %vm524_vm4, %vm524_vm4  ;;  %v92_v34 = vmul.f32 0.20019531, %v60_v25  ;;  %v45_v9 = vld [vmem:[%s764_s0 + $0x28] sm:$0xf]  ;;  %v46_v10 = vld [vmem:[%s764_s0 + $0x2c] sm:$0xf] }
   0x9   :  { %v132_v32 = vsel %vm116_vm5, %v36_v3, %v100_v24  ;;  %v187_v36 = vunpack.c.l.b16 %v131_v31  ;;  %vm123_vm11 = vmpackc.low %vm534_vm7, %vm534_vm7  ;;  %v107_v44 = vpack.c.bf16 %v91_v29, %v91_v29  ;;  %v64_v47 = vunpack.c.l.bf16 %v48_v35  ;;  %v49_v18 = vld [vmem:[%s764_s0 + $0x38] sm:$0xf] }
   0xa   :  { %v188_v37 = vunpack.c.l.b16 %v132_v32  ;;  %v135_v38 = vsel %vm119_vm8, %v39_v6, %v103_v27  ;;  %v136_v39 = vsel %vm120_vm9, %v40_v7, %v104_v28  ;;  %266 = vmatpush.bf16.msra.mxu0 %v441_v22  ;;  %450 = vmatpush.bf16.msra.mxu1 %v441_v22  ;;  %v108_v45 = vpack.c.bf16 %v92_v34, %v92_v34  ;;  %vm124_vm12 = vmpackc.low %vm550_vm10, %vm550_vm10 }
   0xb   :  { %v191_v42 = vunpack.c.l.b16 %v135_v38  ;;  %v192_v43 = vunpack.c.l.b16 %v136_v39  ;;  %451 = vmatpush.bf16.msra.mxu2 %v441_v22  ;;  %452 = vmatpush.bf16.msra.mxu3 %v441_v22  ;;  %vm571_vm13 = vcmp.gt.f32.partialorder %v63_v30, 0.0  ;;  %v95_v49 = vmul.f32 0.20019531, %v63_v30  ;;  %v50_v22 = vld [vmem:[%s764_s0 + $0x3c] sm:$0xf] }
   0xc   :  { %v203_v46 = vpack.c.b16 %v188_v37, %v187_v36  ;;  %v139_v52 = vsel %vm123_vm11, %v498_v8, %v107_v44  ;;  %v140_v53 = vsel %vm124_vm12, %v44_v11, %v108_v45  ;;  %v53_v54 = vunpack.c.l.bf16 %v563_v40  ;;  %vm127_vm15 = vmpackc.low %vm571_vm13, %vm571_vm13 }
   0xd   :  { %v205_v51 = vpack.c.b16 %v192_v43, %v191_v42  ;;  %v195_v57 = vunpack.c.l.b16 %v139_v52  ;;  %v196_v58 = vunpack.c.l.b16 %v140_v53  ;;  %vm591_vm14 = vcmp.gt.f32.partialorder %v64_v47, 0.0 }
   0xe   :  { %v96_v60 = vmul.f32 0.20019531, %v64_v47  ;;  %267 = vmatpush.bf16.msra.mxu0 %v440_v41  ;;  %453 = vmatpush.bf16.msra.mxu1 %v440_v41  ;;  %v111_v61 = vpack.c.bf16 %v95_v49, %v95_v49  ;;  %vm128_vm0 = vmpackc.low %vm591_vm14, %vm591_vm14  ;;  %v54_v62 = vunpack.c.l.bf16 %v38_v50  ;;  %vm601_vm1 = vcmp.gt.f32.partialorder %v53_v54, 0.0 }
   0xf   :  { %v85_v0 = vmul.f32 0.20019531, %v53_v54  ;;  %454 = vmatpush.bf16.msra.mxu2 %v440_v41  ;;  %455 = vmatpush.bf16.msra.mxu3 %v440_v41  ;;  %v207_v1 = vpack.c.b16 %v196_v58, %v195_v57  ;;  %v57_v3 = vunpack.c.l.bf16 %v41_v55  ;;  %v58_v4 = vunpack.c.l.bf16 %v42_v56  ;;  %vm117_vm3 = vmpackc.low %vm601_vm1, %vm601_vm1 }
  0x10   :  { %v112_v2 = vpack.c.bf16 %v96_v60, %v96_v60  ;;  %v143_v5 = vsel %vm127_vm15, %v515_v17, %v111_v61  ;;  %vm606_vm2 = vcmp.gt.f32.partialorder %v54_v62, 0.0  ;;  %v86_v7 = vmul.f32 0.20019531, %v54_v62  ;;  %v697_v60 = vld [vmem:[%s765_s2] ss:$0 sm:$0xff] }
  0x11   :  { %v101_v8 = vpack.c.bf16 %v85_v0, %v85_v0  ;;  %432 = vmatmul.msk.bf16.vlgmr.msra.gmra.mxu0 %vm235_vm6, %v203_v46  ;;  %434 = vmatmul.msk.bf16.vlgmr.msra.gmra.mxu1 %vm235_vm6, %v205_v51  ;;  %v199_v12 = vunpack.c.l.b16 %v143_v5  ;;  %vm118_vm4 = vmpackc.low %vm606_vm2, %vm606_vm2  ;;  %vm629_vm5 = vcmp.gt.f32.partialorder %v57_v3, 0.0  ;;  %vm633_vm7 = vcmp.gt.f32.partialorder %v58_v4, 0.0 }
  0x12   :  { %v144_v11 = vsel %vm128_vm0, %v48_v35, %v112_v2  ;;  %436 = vmatmul.msk.bf16.vlgmr.msra.gmra.mxu2 %vm235_vm6, %v207_v1  ;;  %v102_v16 = vpack.c.bf16 %v86_v7, %v86_v7  ;;  %v89_v17 = vmul.f32 0.20019531, %v57_v3  ;;  %v90_v19 = vmul.f32 0.20019531, %v58_v4  ;;  %vm121_vm8 = vmpackc.low %vm629_vm5, %vm629_vm5 }
  0x13   :  { %v200_v15 = vunpack.c.l.b16 %v144_v11  ;;  %v61_v20 = vunpack.c.l.bf16 %v45_v9  ;;  %v62_v21 = vunpack.c.l.bf16 %v46_v10  ;;  %v133_v24 = vsel %vm117_vm3, %v563_v40, %v101_v8  ;;  %vm122_vm9 = vmpackc.low %vm633_vm7, %vm633_vm7 }
  0x14   :  { %v134_v25 = vsel %vm118_vm4, %v38_v50, %v102_v16  ;;  %v105_v26 = vpack.c.bf16 %v89_v17, %v89_v17  ;;  %v106_v27 = vpack.c.bf16 %v90_v19, %v90_v19  ;;  %v65_v30 = vunpack.c.l.bf16 %v49_v18 }
  0x15   :  { %v209_v23 = vpack.c.b16 %v200_v15, %v199_v12  ;;  %vm656_vm10 = vcmp.gt.f32.partialorder %v61_v20, 0.0  ;;  %vm660_vm11 = vcmp.gt.f32.partialorder %v62_v21, 0.0  ;;  %v93_v32 = vmul.f32 0.20019531, %v61_v20 }
  0x16   :  { %v137_v31 = vsel %vm121_vm8, %v41_v55, %v105_v26  ;;  %v94_v33 = vmul.f32 0.20019531, %v62_v21  ;;  %vm125_vm12 = vmpackc.low %vm656_vm10, %vm656_vm10  ;;  %v66_v34 = vunpack.c.l.bf16 %v50_v22  ;;  %v189_v35 = vunpack.c.l.b16 %v133_v24 }
  0x17   :  { %438 = vmatmul.msk.bf16.vlgmr.msra.gmra.mxu3 %vm235_vm6, %v209_v23  ;;  %v138_v36 = vsel %vm122_vm9, %v42_v56, %v106_v27  ;;  %vm126_vm13 = vmpackc.low %vm660_vm11, %vm660_vm11  ;;  %vm671_vm14 = vcmp.gt.f32.partialorder %v65_v30, 0.0  ;;  %v190_v38 = vunpack.c.l.b16 %v134_v25  ;;  %v109_v39 = vpack.c.bf16 %v93_v32, %v93_v32 }
  0x18   :  { %v110_v40 = vpack.c.bf16 %v94_v33, %v94_v33  ;;  %vm675_vm15 = vcmp.gt.f32.partialorder %v66_v34, 0.0  ;;  %v193_v42 = vunpack.c.l.b16 %v137_v31  ;;  %v194_v43 = vunpack.c.l.b16 %v138_v36  ;;  %vm129_vm0 = vmpackc.low %vm671_vm14, %vm671_vm14 }
  0x19   :  { %v97_v44 = vmul.f32 0.20019531, %v65_v30  ;;  %v98_v45 = vmul.f32 0.20019531, %v66_v34  ;;  %v141_v46 = vsel %vm125_vm12, %v45_v9, %v109_v39  ;;  %vm130_vm1 = vmpackc.low %vm675_vm15, %vm675_vm15  ;;  %v204_v52 = vpack.c.b16 %v190_v38, %v189_v35 }
  0x1a   :  { %v142_v47 = vsel %vm126_vm13, %v46_v10, %v110_v40  ;;  %v197_v48 = vunpack.c.l.b16 %v141_v46  ;;  %v206_v53 = vpack.c.b16 %v194_v43, %v193_v42 }
  0x1b   :  { %v198_v49 = vunpack.c.l.b16 %v142_v47  ;;  %v113_v50 = vpack.c.bf16 %v97_v44, %v97_v44  ;;  %v114_v51 = vpack.c.bf16 %v98_v45, %v98_v45 }
  0x1d   :  { %v145_v54 = vsel %vm129_vm0, %v49_v18, %v113_v50  ;;  %v146_v55 = vsel %vm130_vm1, %v50_v22, %v114_v51  ;;  %v208_v56 = vpack.c.b16 %v198_v49, %v197_v48 }
  0x1e   :  { %v201_v57 = vunpack.c.l.b16 %v145_v54  ;;  %v202_v58 = vunpack.c.l.b16 %v146_v55 }
  0x20   :  { %v210_v59 = vpack.c.b16 %v202_v58, %v201_v57 }
  0x21   :  { %433 = vmatmul.msk.bf16.gmra.mxu0 %vm235_vm6, %v204_v52  ;;  %435 = vmatmul.msk.bf16.gmra.mxu1 %vm235_vm6, %v206_v53 }
  0x22   :  { %437 = vmatmul.msk.bf16.gmra.mxu2 %vm235_vm6, %v208_v56 }
  0x27   :  { %439 = vmatmul.msk.bf16.gmra.mxu3 %vm235_vm6, %v210_v59 }
  0x8e   :  { %v269_v61 = vpop.f32.mrf.mxu0  ;;  %v279_v62 = vpop.f32.mrf.mxu1 }
  0x8f   :  { %v364_v63 = vadd.f32 %v697_v60, %v269_v61  ;;  %v368_v0 = vadd.f32 %v697_v60, %v279_v62 }
  0x91   :  { %v380_v1 = vmax.f32 %v364_v63, 0.0  ;;  %v384_v2 = vmax.f32 %v368_v0, 0.0 }
  0x93   :  { %396 = vst [vmem:[%s766_s3] sm:$0xff] %v380_v1 }
  0x94   :  { %400 = vst [vmem:[%s766_s3 + $0x20] sm:$0xff] %v384_v2 }
  0x95   :  { %v289_v3 = vpop.f32.mrf.mxu2 }
  0x96   :  { %v372_v4 = vadd.f32 %v697_v60, %v289_v3  ;;  %v271_v5 = vpop.f32.mrf.mxu0  ;;  %v281_v6 = vpop.f32.mrf.mxu1 }
  0x97   :  { %v365_v7 = vadd.f32 %v697_v60, %v271_v5  ;;  %v369_v8 = vadd.f32 %v697_v60, %v281_v6 }
  0x98   :  { %v388_v9 = vmax.f32 %v372_v4, 0.0 }
  0x99   :  { %v381_v11 = vmax.f32 %v365_v7, 0.0  ;;  %v385_v12 = vmax.f32 %v369_v8, 0.0 }
  0x9a   :  { %v299_v10 = vpop.f32.mrf.mxu3  ;;  %404 = vst [vmem:[%s766_s3 + $0x40] sm:$0xff] %v388_v9 }
  0x9b   :  { %v376_v13 = vadd.f32 %v697_v60, %v299_v10  ;;  %397 = vst [vmem:[%s766_s3 + $0x8] sm:$0xff] %v381_v11 }
  0x9c   :  { %401 = vst [vmem:[%s766_s3 + $0x28] sm:$0xff] %v385_v12 }
  0x9d   :  { %v392_v14 = vmax.f32 %v376_v13, 0.0  ;;  %v291_v15 = vpop.f32.mrf.mxu2 }
  0x9e   :  { %v373_v16 = vadd.f32 %v697_v60, %v291_v15  ;;  %v274_v17 = vpop.f32.mrf.mxu0  ;;  %v284_v18 = vpop.f32.mrf.mxu1 }
  0x9f   :  { %408 = vst [vmem:[%s766_s3 + $0x60] sm:$0xff] %v392_v14  ;;  %v366_v19 = vadd.f32 %v697_v60, %v274_v17  ;;  %v370_v20 = vadd.f32 %v697_v60, %v284_v18 }
  0xa0   :  { %v389_v21 = vmax.f32 %v373_v16, 0.0 }
  0xa1   :  { %v382_v23 = vmax.f32 %v366_v19, 0.0  ;;  %v386_v24 = vmax.f32 %v370_v20, 0.0 }
  0xa2   :  { %v301_v22 = vpop.f32.mrf.mxu3  ;;  %405 = vst [vmem:[%s766_s3 + $0x48] sm:$0xff] %v389_v21 }
  0xa3   :  { %v377_v25 = vadd.f32 %v697_v60, %v301_v22  ;;  %398 = vst [vmem:[%s766_s3 + $0x10] sm:$0xff] %v382_v23 }
  0xa4   :  { %402 = vst [vmem:[%s766_s3 + $0x30] sm:$0xff] %v386_v24 }
  0xa5   :  { %v393_v26 = vmax.f32 %v377_v25, 0.0  ;;  %v294_v27 = vpop.f32.mrf.mxu2 }
  0xa6   :  { %v374_v28 = vadd.f32 %v697_v60, %v294_v27  ;;  %v276_v29 = vpop.f32.mrf.mxu0  ;;  %v286_v30 = vpop.f32.mrf.mxu1 }
  0xa7   :  { %409 = vst [vmem:[%s766_s3 + $0x68] sm:$0xff] %v393_v26  ;;  %v367_v31 = vadd.f32 %v697_v60, %v276_v29  ;;  %v371_v32 = vadd.f32 %v697_v60, %v286_v30 }
  0xa8   :  { %v390_v33 = vmax.f32 %v374_v28, 0.0 }
  0xa9   :  { %v383_v35 = vmax.f32 %v367_v31, 0.0  ;;  %v387_v36 = vmax.f32 %v371_v32, 0.0 }
  0xaa   :  { %v304_v34 = vpop.f32.mrf.mxu3  ;;  %406 = vst [vmem:[%s766_s3 + $0x50] sm:$0xff] %v390_v33 }
  0xab   :  { %v378_v37 = vadd.f32 %v697_v60, %v304_v34  ;;  %399 = vst [vmem:[%s766_s3 + $0x18] sm:$0xff] %v383_v35 }
  0xac   :  { %403 = vst [vmem:[%s766_s3 + $0x38] sm:$0xff] %v387_v36 }
  0xad   :  { %v394_v38 = vmax.f32 %v378_v37, 0.0  ;;  %v296_v39 = vpop.f32.mrf.mxu2 }
  0xae   :  { %v375_v40 = vadd.f32 %v697_v60, %v296_v39 }
  0xaf   :  { %410 = vst [vmem:[%s766_s3 + $0x70] sm:$0xff] %v394_v38 }
  0xb0   :  { %v391_v41 = vmax.f32 %v375_v40, 0.0 }
  0xb2   :  { %v306_v42 = vpop.f32.mrf.mxu3  ;;  %407 = vst [vmem:[%s766_s3 + $0x58] sm:$0xff] %v391_v41 }
  0xb3   :  { %v379_v43 = vadd.f32 %v697_v60, %v306_v42 }
  0xb5   :  { %v395_v44 = vmax.f32 %v379_v43, 0.0 }
  0xb7   :  { %411 = vst [vmem:[%s766_s3 + $0x78] sm:$0xff] %v395_v44 }

// kernel: unet_innermost_forward.4
= control target key start
LH: loop header
LB: loop body
LE: loop exit
PB: predicated region body
PF: predicated region fallthrough
CT: control target
= control target key end

     0   :  { %vm145_vm0 = vcmask 261120   ;;  %s2083_s1 = inlined_call_operand.vmem [shape: bf16[4,32,128], index: 1, kind: input, shape index: {}]   ;;  %s2084_s0 = inlined_call_operand.vmem [shape: bf16[4,128,32], index: 0, kind: input, shape index: {}]   ;;  %s2085_s2 = inlined_call_operand.vmem [shape: f32[1,128], index: 2, kind: input, shape index: {}]   ;;  %s2086_s3 = inlined_call_operand.vmem [shape: f32[4,128,128], index: 3, kind: output, shape index: {0}]   ;;  %s2087_s4 = inlined_call_operand.vmem [shape: f32[1,8,128], index: 4, kind: output, shape index: {1}]   ;;  %s2088_s5 = inlined_call_operand.vmem [shape: f32[1,8,128], index: 5, kind: output, shape index: {2}]  }
   0x1   :  { %v1386_v0 = vld [vmem:[%s2083_s1 + $0x8] sm:$0xff]  ;;  %v1396_v1 = vld [vmem:[%s2083_s1 + $0x18] sm:$0xff]  ;;  %v1385_v4 = vld [vmem:[%s2083_s1] sm:$0xff] }
   0x2   :  { %v1406_v2 = vld [vmem:[%s2083_s1 + $0x28] sm:$0xff]  ;;  %v1416_v3 = vld [vmem:[%s2083_s1 + $0x38] sm:$0xff]  ;;  %176 = vmatpush.bf16.msra.mxu0 %v1386_v0  ;;  %447 = vmatpush.bf16.msra.mxu1 %v1396_v1  ;;  %v1395_v5 = vld [vmem:[%s2083_s1 + $0x10] sm:$0xff] }
   0x3   :  { %687 = vmatpush.bf16.msra.mxu2 %v1406_v2  ;;  %927 = vmatpush.bf16.msra.mxu3 %v1416_v3  ;;  %v1405_v6 = vld [vmem:[%s2083_s1 + $0x20] sm:$0xff]  ;;  %v1415_v7 = vld [vmem:[%s2083_s1 + $0x30] sm:$0xff]  ;;  %v1378_v12 = vld [vmem:[%s2084_s0 + $0x8] sm:$0xff] }
   0x4   :  { %v1377_v8 = vld [vmem:[%s2084_s0] sm:$0xff]  ;;  %v1388_v13 = vld [vmem:[%s2084_s0 + $0x48] sm:$0xff]  ;;  %v1379_v16 = vld [vmem:[%s2084_s0 + $0x10] sm:$0xff] }
   0x5   :  { %v1387_v9 = vld [vmem:[%s2084_s0 + $0x40] sm:$0xff]  ;;  %v1398_v14 = vld [vmem:[%s2084_s0 + $0x88] sm:$0xff]  ;;  %v1389_v17 = vld [vmem:[%s2084_s0 + $0x50] sm:$0xff] }
   0x6   :  { %177 = vmatpush.bf16.msra.mxu0 %v1385_v4  ;;  %448 = vmatpush.bf16.msra.mxu1 %v1395_v5  ;;  %v1397_v10 = vld [vmem:[%s2084_s0 + $0x80] sm:$0xff]  ;;  %v1408_v15 = vld [vmem:[%s2084_s0 + $0xc8] sm:$0xff]  ;;  %v1399_v18 = vld [vmem:[%s2084_s0 + $0x90] sm:$0xff] }
   0x7   :  { %v1407_v11 = vld [vmem:[%s2084_s0 + $0xc0] sm:$0xff]  ;;  %688 = vmatpush.bf16.msra.mxu2 %v1405_v6  ;;  %928 = vmatpush.bf16.msra.mxu3 %v1415_v7  ;;  %v1409_v19 = vld [vmem:[%s2084_s0 + $0xd0] sm:$0xff]  ;;  %v1380_v20 = vld [vmem:[%s2084_s0 + $0x18] sm:$0xff] }
   0x8   :  { %v1390_v21 = vld [vmem:[%s2084_s0 + $0x58] sm:$0xff]  ;;  %v1381_v24 = vld [vmem:[%s2084_s0 + $0x20] sm:$0xff]  ;;  %v1382_v28 = vld [vmem:[%s2084_s0 + $0x28] sm:$0xff] }
   0x9   :  { %1117 = vmatmul.msk.bf16.vlgmr.msra.gmra.mxu0 %vm145_vm0, %v1377_v8  ;;  %1185 = vmatmul.msk.bf16.vlgmr.msra.gmra.mxu1 %vm145_vm0, %v1387_v9  ;;  %v1400_v22 = vld [vmem:[%s2084_s0 + $0x98] sm:$0xff]  ;;  %v1391_v25 = vld [vmem:[%s2084_s0 + $0x60] sm:$0xff]  ;;  %v1392_v29 = vld [vmem:[%s2084_s0 + $0x68] sm:$0xff] }
   0xa   :  { %1269 = vmatmul.msk.bf16.vlgmr.msra.gmra.mxu2 %vm145_vm0, %v1397_v10  ;;  %1353 = vmatmul.msk.bf16.vlgmr.msra.gmra.mxu3 %vm145_vm0, %v1407_v11  ;;  %v1410_v23 = vld [vmem:[%s2084_s0 + $0xd8] sm:$0xff]  ;;  %v1401_v26 = vld [vmem:[%s2084_s0 + $0xa0] sm:$0xff]  ;;  %v1402_v30 = vld [vmem:[%s2084_s0 + $0xa8] sm:$0xff] }
   0xb   :  { %v1411_v27 = vld [vmem:[%s2084_s0 + $0xe0] sm:$0xff]  ;;  %v1412_v31 = vld [vmem:[%s2084_s0 + $0xe8] sm:$0xff]  ;;  %v1383_v32 = vld [vmem:[%s2084_s0 + $0x30] sm:$0xff] }
   0xc   :  { %v1393_v33 = vld [vmem:[%s2084_s0 + $0x70] sm:$0xff]  ;;  %v1384_v36 = vld [vmem:[%s2084_s0 + $0x38] sm:$0xff]  ;;  %v1603_v40 = vld [vmem:[%s2085_s2] ss:$0 sm:$0xff] }
   0xd   :  { %v1403_v34 = vld [vmem:[%s2084_s0 + $0xb0] sm:$0xff]  ;;  %v1394_v37 = vld [vmem:[%s2084_s0 + $0x78] sm:$0xff] }
   0xe   :  { %v1413_v35 = vld [vmem:[%s2084_s0 + $0xf0] sm:$0xff]  ;;  %v1404_v38 = vld [vmem:[%s2084_s0 + $0xb8] sm:$0xff] }
   0xf   :  { %v1414_v39 = vld [vmem:[%s2084_s0 + $0xf8] sm:$0xff] }
  0x19   :  { %1118 = vmatmul.msk.bf16.gmra.mxu0 %vm145_vm0, %v1378_v12  ;;  %1186 = vmatmul.msk.bf16.gmra.mxu1 %vm145_vm0, %v1388_v13 }
  0x1a   :  { %1270 = vmatmul.msk.bf16.gmra.mxu2 %vm145_vm0, %v1398_v14  ;;  %1354 = vmatmul.msk.bf16.gmra.mxu3 %vm145_vm0, %v1408_v15 }
  0x29   :  { %1119 = vmatmul.msk.bf16.gmra.mxu0 %vm145_vm0, %v1379_v16  ;;  %1187 = vmatmul.msk.bf16.gmra.mxu1 %vm145_vm0, %v1389_v17 }
  0x2a   :  { %1271 = vmatmul.msk.bf16.gmra.mxu2 %vm145_vm0, %v1399_v18  ;;  %1355 = vmatmul.msk.bf16.gmra.mxu3 %vm145_vm0, %v1409_v19 }
  0x39   :  { %1120 = vmatmul.msk.bf16.gmra.mxu0 %vm145_vm0, %v1380_v20  ;;  %1188 = vmatmul.msk.bf16.gmra.mxu1 %vm145_vm0, %v1390_v21 }
  0x3a   :  { %1272 = vmatmul.msk.bf16.gmra.mxu2 %vm145_vm0, %v1400_v22  ;;  %1356 = vmatmul.msk.bf16.gmra.mxu3 %vm145_vm0, %v1410_v23 }
  0x49   :  { %1121 = vmatmul.msk.bf16.gmra.mxu0 %vm145_vm0, %v1381_v24  ;;  %1189 = vmatmul.msk.bf16.gmra.mxu1 %vm145_vm0, %v1391_v25 }
  0x4a   :  { %1273 = vmatmul.msk.bf16.gmra.mxu2 %vm145_vm0, %v1401_v26  ;;  %1357 = vmatmul.msk.bf16.gmra.mxu3 %vm145_vm0, %v1411_v27 }
  0x59   :  { %1122 = vmatmul.msk.bf16.gmra.mxu0 %vm145_vm0, %v1382_v28  ;;  %1190 = vmatmul.msk.bf16.gmra.mxu1 %vm145_vm0, %v1392_v29 }
  0x5a   :  { %1274 = vmatmul.msk.bf16.gmra.mxu2 %vm145_vm0, %v1402_v30  ;;  %1358 = vmatmul.msk.bf16.gmra.mxu3 %vm145_vm0, %v1412_v31 }
  0x69   :  { %1123 = vmatmul.msk.bf16.gmra.mxu0 %vm145_vm0, %v1383_v32  ;;  %1191 = vmatmul.msk.bf16.gmra.mxu1 %vm145_vm0, %v1393_v33 }
  0x6a   :  { %1275 = vmatmul.msk.bf16.gmra.mxu2 %vm145_vm0, %v1403_v34  ;;  %1359 = vmatmul.msk.bf16.gmra.mxu3 %vm145_vm0, %v1413_v35 }
  0x79   :  { %1124 = vmatmul.msk.bf16.gmra.mxu0 %vm145_vm0, %v1384_v36  ;;  %1192 = vmatmul.msk.bf16.gmra.mxu1 %vm145_vm0, %v1394_v37 }
  0x7a   :  { %1276 = vmatmul.msk.bf16.gmra.mxu2 %vm145_vm0, %v1404_v38  ;;  %1360 = vmatmul.msk.bf16.gmra.mxu3 %vm145_vm0, %v1414_v39 }
  0x86   :  { %v179_v41 = vpop.f32.mrf.mxu0  ;;  %v450_v42 = vpop.f32.mrf.mxu1 }
  0x87   :  { %v180_v43 = vadd.f32 %v1603_v40, %v179_v41  ;;  %v451_v44 = vadd.f32 %v1603_v40, %v450_v42 }
  0x89   :  { %219 = vst [vmem:[%s2086_s3] sm:$0xff] %v180_v43  ;;  %v305_v53 = vmul.f32 %v180_v43, %v180_v43  ;;  %v545_v54 = vmul.f32 %v451_v44, %v451_v44 }
  0x8a   :  { %1193 = vst [vmem:[%s2086_s3 + $0x80] sm:$0xff] %v451_v44 }
  0x8d   :  { %v690_v45 = vpop.f32.mrf.mxu2  ;;  %v930_v46 = vpop.f32.mrf.mxu3 }
  0x8e   :  { %v691_v47 = vadd.f32 %v1603_v40, %v690_v45  ;;  %v931_v48 = vadd.f32 %v1603_v40, %v930_v46  ;;  %v181_v49 = vpop.f32.mrf.mxu0  ;;  %v452_v50 = vpop.f32.mrf.mxu1 }
  0x8f   :  { %v182_v51 = vadd.f32 %v1603_v40, %v181_v49  ;;  %v453_v52 = vadd.f32 %v1603_v40, %v452_v50 }
  0x90   :  { %1277 = vst [vmem:[%s2086_s3 + $0x100] sm:$0xff] %v691_v47  ;;  %v785_v3 = vmul.f32 %v691_v47, %v691_v47  ;;  %v1025_v4 = vmul.f32 %v931_v48, %v931_v48 }
  0x91   :  { %1361 = vst [vmem:[%s2086_s3 + $0x180] sm:$0xff] %v931_v48  ;;  %v283_v55 = vadd.f32 %v182_v51, %v180_v43  ;;  %v306_v56 = vmul.f32 %v182_v51, %v182_v51  ;;  %v523_v57 = vadd.f32 %v453_v52, %v451_v44  ;;  %v546_v58 = vmul.f32 %v453_v52, %v453_v52 }
  0x92   :  { %220 = vst [vmem:[%s2086_s3 + $0x8] sm:$0xff] %v182_v51 }
  0x93   :  { %v321_v59 = vadd.f32 %v306_v56, %v305_v53  ;;  %1194 = vst [vmem:[%s2086_s3 + $0x88] sm:$0xff] %v453_v52  ;;  %v561_v60 = vadd.f32 %v546_v58, %v545_v54 }
  0x95   :  { %v692_v61 = vpop.f32.mrf.mxu2  ;;  %v932_v62 = vpop.f32.mrf.mxu3 }
  0x96   :  { %v693_v63 = vadd.f32 %v1603_v40, %v692_v61  ;;  %v933_v0 = vadd.f32 %v1603_v40, %v932_v62  ;;  %v184_v1 = vpop.f32.mrf.mxu0  ;;  %v455_v2 = vpop.f32.mrf.mxu1 }
  0x97   :  { %v185_v5 = vadd.f32 %v1603_v40, %v184_v1  ;;  %v456_v6 = vadd.f32 %v1603_v40, %v455_v2 }
  0x98   :  { %1278 = vst [vmem:[%s2086_s3 + $0x108] sm:$0xff] %v693_v63  ;;  %v763_v7 = vadd.f32 %v693_v63, %v691_v47  ;;  %v786_v8 = vmul.f32 %v693_v63, %v693_v63  ;;  %v1003_v9 = vadd.f32 %v933_v0, %v931_v48  ;;  %v1026_v10 = vmul.f32 %v933_v0, %v933_v0 }
  0x99   :  { %1362 = vst [vmem:[%s2086_s3 + $0x188] sm:$0xff] %v933_v0  ;;  %v284_v11 = vadd.f32 %v283_v55, %v185_v5  ;;  %v307_v12 = vmul.f32 %v185_v5, %v185_v5  ;;  %v524_v13 = vadd.f32 %v523_v57, %v456_v6  ;;  %v547_v14 = vmul.f32 %v456_v6, %v456_v6 }
  0x9a   :  { %v801_v15 = vadd.f32 %v786_v8, %v785_v3  ;;  %v1041_v16 = vadd.f32 %v1026_v10, %v1025_v4  ;;  %221 = vst [vmem:[%s2086_s3 + $0x10] sm:$0xff] %v185_v5 }
  0x9b   :  { %v322_v17 = vadd.f32 %v321_v59, %v307_v12  ;;  %1195 = vst [vmem:[%s2086_s3 + $0x90] sm:$0xff] %v456_v6  ;;  %v562_v18 = vadd.f32 %v561_v60, %v547_v14 }
  0x9d   :  { %v695_v19 = vpop.f32.mrf.mxu2  ;;  %v935_v20 = vpop.f32.mrf.mxu3 }
  0x9e   :  { %v696_v21 = vadd.f32 %v1603_v40, %v695_v19  ;;  %v936_v22 = vadd.f32 %v1603_v40, %v935_v20  ;;  %v186_v23 = vpop.f32.mrf.mxu0  ;;  %v457_v24 = vpop.f32.mrf.mxu1 }
  0x9f   :  { %v187_v25 = vadd.f32 %v1603_v40, %v186_v23  ;;  %v458_v26 = vadd.f32 %v1603_v40, %v457_v24 }
  0xa0   :  { %1279 = vst [vmem:[%s2086_s3 + $0x110] sm:$0xff] %v696_v21  ;;  %v764_v27 = vadd.f32 %v763_v7, %v696_v21  ;;  %v787_v28 = vmul.f32 %v696_v21, %v696_v21  ;;  %v1004_v29 = vadd.f32 %v1003_v9, %v936_v22  ;;  %v1027_v30 = vmul.f32 %v936_v22, %v936_v22 }
  0xa1   :  { %1363 = vst [vmem:[%s2086_s3 + $0x190] sm:$0xff] %v936_v22  ;;  %v285_v31 = vadd.f32 %v284_v11, %v187_v25  ;;  %v308_v32 = vmul.f32 %v187_v25, %v187_v25  ;;  %v525_v33 = vadd.f32 %v524_v13, %v458_v26  ;;  %v548_v34 = vmul.f32 %v458_v26, %v458_v26 }
  0xa2   :  { %v802_v35 = vadd.f32 %v801_v15, %v787_v28  ;;  %v1042_v36 = vadd.f32 %v1041_v16, %v1027_v30  ;;  %222 = vst [vmem:[%s2086_s3 + $0x18] sm:$0xff] %v187_v25 }
  0xa3   :  { %v323_v37 = vadd.f32 %v322_v17, %v308_v32  ;;  %1196 = vst [vmem:[%s2086_s3 + $0x98] sm:$0xff] %v458_v26  ;;  %v563_v38 = vadd.f32 %v562_v18, %v548_v34 }
  0xa5   :  { %v697_v39 = vpop.f32.mrf.mxu2  ;;  %v937_v41 = vpop.f32.mrf.mxu3 }
  0xa6   :  { %v698_v42 = vadd.f32 %v1603_v40, %v697_v39  ;;  %v938_v43 = vadd.f32 %v1603_v40, %v937_v41  ;;  %v189_v44 = vpop.f32.mrf.mxu0  ;;  %v460_v45 = vpop.f32.mrf.mxu1 }
  0xa7   :  { %v190_v46 = vadd.f32 %v1603_v40, %v189_v44  ;;  %v461_v47 = vadd.f32 %v1603_v40, %v460_v45 }
  0xa8   :  { %1280 = vst [vmem:[%s2086_s3 + $0x118] sm:$0xff] %v698_v42  ;;  %v765_v48 = vadd.f32 %v764_v27, %v698_v42  ;;  %v788_v49 = vmul.f32 %v698_v42, %v698_v42  ;;  %v1005_v50 = vadd.f32 %v1004_v29, %v938_v43  ;;  %v1028_v51 = vmul.f32 %v938_v43, %v938_v43 }
  0xa9   :  { %1364 = vst [vmem:[%s2086_s3 + $0x198] sm:$0xff] %v938_v43  ;;  %v286_v52 = vadd.f32 %v285_v31, %v190_v46  ;;  %v309_v53 = vmul.f32 %v190_v46, %v190_v46  ;;  %v526_v54 = vadd.f32 %v525_v33, %v461_v47  ;;  %v549_v55 = vmul.f32 %v461_v47, %v461_v47 }
  0xaa   :  { %v803_v56 = vadd.f32 %v802_v35, %v788_v49  ;;  %v1043_v57 = vadd.f32 %v1042_v36, %v1028_v51  ;;  %223 = vst [vmem:[%s2086_s3 + $0x20] sm:$0xff] %v190_v46 }
  0xab   :  { %v324_v58 = vadd.f32 %v323_v37, %v309_v53  ;;  %1197 = vst [vmem:[%s2086_s3 + $0xa0] sm:$0xff] %v461_v47  ;;  %v564_v59 = vadd.f32 %v563_v38, %v549_v55 }
  0xad   :  { %v700_v60 = vpop.f32.mrf.mxu2  ;;  %v940_v61 = vpop.f32.mrf.mxu3 }
  0xae   :  { %v701_v62 = vadd.f32 %v1603_v40, %v700_v60  ;;  %v941_v63 = vadd.f32 %v1603_v40, %v940_v61  ;;  %v191_v0 = vpop.f32.mrf.mxu0  ;;  %v462_v1 = vpop.f32.mrf.mxu1 }
  0xaf   :  { %v192_v2 = vadd.f32 %v1603_v40, %v191_v0  ;;  %v463_v3 = vadd.f32 %v1603_v40, %v462_v1 }
  0xb0   :  { %1281 = vst [vmem:[%s2086_s3 + $0x120] sm:$0xff] %v701_v62  ;;  %v1684_v4 = vadd.f32 %v765_v48, %v701_v62  ;;  %v789_v5 = vmul.f32 %v701_v62, %v701_v62  ;;  %v1686_v6 = vadd.f32 %v1005_v50, %v941_v63  ;;  %v1029_v7 = vmul.f32 %v941_v63, %v941_v63 }
  0xb1   :  { %1365 = vst [vmem:[%s2086_s3 + $0x1a0] sm:$0xff] %v941_v63  ;;  %v1691_v8 = vadd.f32 %v286_v52, %v192_v2  ;;  %v310_v9 = vmul.f32 %v192_v2, %v192_v2  ;;  %v1693_v10 = vadd.f32 %v526_v54, %v463_v3  ;;  %v550_v11 = vmul.f32 %v463_v3, %v463_v3 }
  0xb2   :  { %v1695_v12 = vadd.f32 %v803_v56, %v789_v5  ;;  %v1697_v13 = vadd.f32 %v1043_v57, %v1029_v7  ;;  %224 = vst [vmem:[%s2086_s3 + $0x28] sm:$0xff] %v192_v2 }
  0xb3   :  { %v1702_v14 = vadd.f32 %v324_v58, %v310_v9  ;;  %1198 = vst [vmem:[%s2086_s3 + $0xa8] sm:$0xff] %v463_v3  ;;  %v1707_v15 = vadd.f32 %v564_v59, %v550_v11 }
  0xb5   :  { %v702_v16 = vpop.f32.mrf.mxu2  ;;  %v942_v17 = vpop.f32.mrf.mxu3 }
  0xb6   :  { %v1710_v18 = vadd.f32 %v1603_v40, %v702_v16  ;;  %v1713_v19 = vadd.f32 %v1603_v40, %v942_v17  ;;  %v194_v20 = vpop.f32.mrf.mxu0  ;;  %v465_v21 = vpop.f32.mrf.mxu1 }
  0xb7   :  { %v1720_v22 = vadd.f32 %v1603_v40, %v194_v20  ;;  %v1727_v23 = vadd.f32 %v1603_v40, %v465_v21 }
  0xb8   :  { %1282 = vst [vmem:[%s2086_s3 + $0x128] sm:$0xff] %v1710_v18  ;;  %v790_v1 = vmul.f32 %v1710_v18, %v1710_v18  ;;  %v1030_v2 = vmul.f32 %v1713_v19, %v1713_v19  ;;  %v767_v7 = vadd.f32 %v1684_v4, %v1710_v18  ;;  %v1007_v9 = vadd.f32 %v1686_v6, %v1713_v19 }
  0xb9   :  { %1366 = vst [vmem:[%s2086_s3 + $0x1a8] sm:$0xff] %v1713_v19  ;;  %v311_v3 = vmul.f32 %v1720_v22, %v1720_v22  ;;  %v551_v5 = vmul.f32 %v1727_v23, %v1727_v23  ;;  %v288_v11 = vadd.f32 %v1691_v8, %v1720_v22  ;;  %v528_v16 = vadd.f32 %v1693_v10, %v1727_v23 }
  0xba   :  { %225 = vst [vmem:[%s2086_s3 + $0x30] sm:$0xff] %v1720_v22  ;;  %v805_v17 = vadd.f32 %v1695_v12, %v790_v1  ;;  %v1045_v20 = vadd.f32 %v1697_v13, %v1030_v2 }
  0xbb   :  { %1199 = vst [vmem:[%s2086_s3 + $0xb0] sm:$0xff] %v1727_v23  ;;  %v326_v22 = vadd.f32 %v1702_v14, %v311_v3  ;;  %v566_v23 = vadd.f32 %v1707_v15, %v551_v5 }
  0xbd   :  { %v705_v24 = vpop.f32.mrf.mxu2  ;;  %v945_v25 = vpop.f32.mrf.mxu3 }
  0xbe   :  { %v1738_v26 = vadd.f32 %v1603_v40, %v705_v24  ;;  %v196_v27 = vpop.f32.mrf.mxu0  ;;  %v467_v28 = vpop.f32.mrf.mxu1  ;;  %v1741_v29 = vadd.f32 %v1603_v40, %v945_v25 }
  0xbf   :  { %v1744_v30 = vadd.f32 %v1603_v40, %v196_v27  ;;  %v1747_v31 = vadd.f32 %v1603_v40, %v467_v28 }
  0xc0   :  { %1283 = vst [vmem:[%s2086_s3 + $0x130] sm:$0xff] %v1738_v26  ;;  %v791_v21 = vmul.f32 %v1738_v26, %v1738_v26  ;;  %v1031_v24 = vmul.f32 %v1741_v29, %v1741_v29  ;;  %v768_v25 = vadd.f32 %v767_v7, %v1738_v26  ;;  %v1008_v15 = vadd.f32 %v1007_v9, %v1741_v29 }
  0xc1   :  { %1367 = vst [vmem:[%s2086_s3 + $0x1b0] sm:$0xff] %v1741_v29  ;;  %v312_v6 = vmul.f32 %v1744_v30, %v1744_v30  ;;  %v552_v8 = vmul.f32 %v1747_v31, %v1747_v31  ;;  %v289_v26 = vadd.f32 %v288_v11, %v1744_v30 }
  0xc2   :  { %226 = vst [vmem:[%s2086_s3 + $0x38] sm:$0xff] %v1744_v30 }
  0xc3   :  { %1200 = vst [vmem:[%s2086_s3 + $0xb8] sm:$0xff] %v1747_v31 }
  0xc5   :  { %v707_v32 = vpop.f32.mrf.mxu2  ;;  %v947_v33 = vpop.f32.mrf.mxu3 }
  0xc6   :  { %v1766_v34 = vadd.f32 %v1603_v40, %v707_v32  ;;  %v1769_v35 = vadd.f32 %v1603_v40, %v947_v33  ;;  %v199_v36 = vpop.f32.mrf.mxu0  ;;  %v470_v37 = vpop.f32.mrf.mxu1 }
  0xc7   :  { %v1776_v38 = vadd.f32 %v1603_v40, %v199_v36  ;;  %v1783_v39 = vadd.f32 %v1603_v40, %v470_v37  ;;  %v529_v36 = vadd.f32 %v528_v16, %v1747_v31 }
  0xc8   :  { %1284 = vst [vmem:[%s2086_s3 + $0x138] sm:$0xff] %v1766_v34  ;;  %v792_v27 = vmul.f32 %v1766_v34, %v1766_v34  ;;  %v1032_v28 = vmul.f32 %v1769_v35, %v1769_v35  ;;  %v769_v29 = vadd.f32 %v768_v25, %v1766_v34  ;;  %v1009_v30 = vadd.f32 %v1008_v15, %v1769_v35 }
  0xc9   :  { %1368 = vst [vmem:[%s2086_s3 + $0x1b8] sm:$0xff] %v1769_v35  ;;  %v313_v32 = vmul.f32 %v1776_v38, %v1776_v38  ;;  %v553_v33 = vmul.f32 %v1783_v39, %v1783_v39  ;;  %v290_v31 = vadd.f32 %v289_v26, %v1776_v38 }
  0xca   :  { %227 = vst [vmem:[%s2086_s3 + $0x40] sm:$0xff] %v1776_v38 }
  0xcb   :  { %1201 = vst [vmem:[%s2086_s3 + $0xc0] sm:$0xff] %v1783_v39 }
  0xcd   :  { %v710_v41 = vpop.f32.mrf.mxu2  ;;  %v950_v42 = vpop.f32.mrf.mxu3 }
  0xce   :  { %v1794_v43 = vadd.f32 %v1603_v40, %v710_v41  ;;  %v201_v44 = vpop.f32.mrf.mxu0  ;;  %v472_v45 = vpop.f32.mrf.mxu1  ;;  %v1797_v46 = vadd.f32 %v1603_v40, %v950_v42  ;;  %v806_v41 = vadd.f32 %v805_v17, %v791_v21  ;;  %v1046_v42 = vadd.f32 %v1045_v20, %v1031_v24 }
  0xcf   :  { %v1800_v47 = vadd.f32 %v1603_v40, %v201_v44  ;;  %v1803_v48 = vadd.f32 %v1603_v40, %v472_v45  ;;  %v327_v44 = vadd.f32 %v326_v22, %v312_v6  ;;  %v567_v45 = vadd.f32 %v566_v23, %v552_v8 }
  0xd0   :  { %1285 = vst [vmem:[%s2086_s3 + $0x140] sm:$0xff] %v1794_v43  ;;  %v1033_v34 = vmul.f32 %v1797_v46, %v1797_v46  ;;  %v1010_v1 = vadd.f32 %v1009_v30, %v1797_v46 }
  0xd1   :  { %1369 = vst [vmem:[%s2086_s3 + $0x1c0] sm:$0xff] %v1797_v46  ;;  %v314_v35 = vmul.f32 %v1800_v47, %v1800_v47  ;;  %v554_v38 = vmul.f32 %v1803_v48, %v1803_v48  ;;  %v291_v46 = vadd.f32 %v290_v31, %v1800_v47 }
  0xd2   :  { %228 = vst [vmem:[%s2086_s3 + $0x48] sm:$0xff] %v1800_v47 }
  0xd3   :  { %1202 = vst [vmem:[%s2086_s3 + $0xc8] sm:$0xff] %v1803_v48 }
  0xd5   :  { %v712_v49 = vpop.f32.mrf.mxu2  ;;  %v952_v50 = vpop.f32.mrf.mxu3 }
  0xd6   :  { %v1822_v51 = vadd.f32 %v1603_v40, %v712_v49  ;;  %v1825_v52 = vadd.f32 %v1603_v40, %v952_v50  ;;  %v204_v53 = vpop.f32.mrf.mxu0  ;;  %v475_v54 = vpop.f32.mrf.mxu1  ;;  %v530_v49 = vadd.f32 %v529_v36, %v1783_v39  ;;  %v807_v50 = vadd.f32 %v806_v41, %v792_v27 }
  0xd7   :  { %v1832_v55 = vadd.f32 %v1603_v40, %v204_v53  ;;  %v1839_v56 = vadd.f32 %v1603_v40, %v475_v54  ;;  %v1047_v53 = vadd.f32 %v1046_v42, %v1032_v28  ;;  %v328_v54 = vadd.f32 %v327_v44, %v313_v32 }
  0xd8   :  { %1286 = vst [vmem:[%s2086_s3 + $0x148] sm:$0xff] %v1822_v51  ;;  %v794_v2 = vmul.f32 %v1822_v51, %v1822_v51  ;;  %v1034_v9 = vmul.f32 %v1825_v52, %v1825_v52  ;;  %v531_v17 = vadd.f32 %v530_v49, %v1803_v48  ;;  %v1011_v48 = vadd.f32 %v1010_v1, %v1825_v52 }
  0xd9   :  { %1370 = vst [vmem:[%s2086_s3 + $0x1c8] sm:$0xff] %v1825_v52  ;;  %v315_v20 = vmul.f32 %v1832_v55, %v1832_v55  ;;  %v555_v21 = vmul.f32 %v1839_v56, %v1839_v56  ;;  %v292_v23 = vadd.f32 %v291_v46, %v1832_v55 }
  0xda   :  { %229 = vst [vmem:[%s2086_s3 + $0x50] sm:$0xff] %v1832_v55  ;;  %v532_v25 = vadd.f32 %v531_v17, %v1839_v56 }
  0xdb   :  { %1203 = vst [vmem:[%s2086_s3 + $0xd0] sm:$0xff] %v1839_v56 }
  0xdd   :  { %v715_v57 = vpop.f32.mrf.mxu2  ;;  %v955_v58 = vpop.f32.mrf.mxu3 }
  0xde   :  { %v1850_v59 = vadd.f32 %v1603_v40, %v715_v57  ;;  %v206_v60 = vpop.f32.mrf.mxu0  ;;  %v477_v61 = vpop.f32.mrf.mxu1  ;;  %v1853_v62 = vadd.f32 %v1603_v40, %v955_v58  ;;  %v568_v57 = vadd.f32 %v567_v45, %v553_v33  ;;  %v793_v58 = vmul.f32 %v1794_v43, %v1794_v43 }
  0xdf   :  { %v1856_v63 = vadd.f32 %v1603_v40, %v206_v60  ;;  %v1859_v0 = vadd.f32 %v1603_v40, %v477_v61  ;;  %v770_v61 = vadd.f32 %v769_v29, %v1794_v43 }
  0xe0   :  { %1287 = vst [vmem:[%s2086_s3 + $0x150] sm:$0xff] %v1850_v59  ;;  %v808_v24 = vadd.f32 %v807_v50, %v793_v58  ;;  %v569_v6 = vadd.f32 %v568_v57, %v554_v38  ;;  %v795_v8 = vmul.f32 %v1850_v59, %v1850_v59  ;;  %v1012_v33 = vadd.f32 %v1011_v48, %v1853_v62 }
  0xe1   :  { %1371 = vst [vmem:[%s2086_s3 + $0x1d0] sm:$0xff] %v1853_v62  ;;  %v771_v47 = vadd.f32 %v770_v61, %v1822_v51  ;;  %v316_v27 = vmul.f32 %v1856_v63, %v1856_v63  ;;  %v556_v28 = vmul.f32 %v1859_v0, %v1859_v0  ;;  %v293_v55 = vadd.f32 %v292_v23, %v1856_v63 }
  0xe2   :  { %230 = vst [vmem:[%s2086_s3 + $0x58] sm:$0xff] %v1856_v63  ;;  %v570_v52 = vadd.f32 %v569_v6, %v555_v21  ;;  %v533_v56 = vadd.f32 %v532_v25, %v1859_v0 }
  0xe3   :  { %1204 = vst [vmem:[%s2086_s3 + $0xd8] sm:$0xff] %v1859_v0  ;;  %v772_v32 = vadd.f32 %v771_v47, %v1850_v59 }
  0xe4   :  { %v571_v31 = vadd.f32 %v570_v52, %v556_v28 }
  0xe5   :  { %v717_v4 = vpop.f32.mrf.mxu2  ;;  %v957_v18 = vpop.f32.mrf.mxu3 }
  0xe6   :  { %v1904_v10 = vadd.f32 %v1603_v40, %v717_v4  ;;  %v1907_v12 = vadd.f32 %v1603_v40, %v957_v18  ;;  %v209_v13 = vpop.f32.mrf.mxu0  ;;  %v480_v19 = vpop.f32.mrf.mxu1  ;;  %v1048_v4 = vadd.f32 %v1047_v53, %v1033_v34  ;;  %v329_v18 = vadd.f32 %v328_v54, %v314_v35 }
  0xe7   :  { %v1925_v14 = vadd.f32 %v1603_v40, %v209_v13  ;;  %v1935_v37 = vadd.f32 %v1603_v40, %v480_v19  ;;  %v1035_v13 = vmul.f32 %v1853_v62, %v1853_v62  ;;  %v809_v19 = vadd.f32 %v808_v24, %v794_v2 }
  0xe8   :  { %1288 = vst [vmem:[%s2086_s3 + $0x158] sm:$0xff] %v1904_v10  ;;  %v1049_v22 = vadd.f32 %v1048_v4, %v1034_v9  ;;  %v330_v51 = vadd.f32 %v329_v18, %v315_v20  ;;  %v796_v30 = vmul.f32 %v1904_v10, %v1904_v10  ;;  %v1036_v59 = vmul.f32 %v1907_v12, %v1907_v12 }
  0xe9   :  { %1372 = vst [vmem:[%s2086_s3 + $0x1d8] sm:$0xff] %v1907_v12  ;;  %v810_v36 = vadd.f32 %v809_v19, %v795_v8  ;;  %v317_v62 = vmul.f32 %v1925_v14, %v1925_v14  ;;  %v557_v63 = vmul.f32 %v1935_v37, %v1935_v37  ;;  %v773_v53 = vadd.f32 %v772_v32, %v1904_v10 }
  0xea   :  { %231 = vst [vmem:[%s2086_s3 + $0x60] sm:$0xff] %v1925_v14  ;;  %v1050_v41 = vadd.f32 %v1049_v22, %v1035_v13  ;;  %v331_v0 = vadd.f32 %v330_v51, %v316_v27  ;;  %v1013_v54 = vadd.f32 %v1012_v33, %v1907_v12  ;;  %v294_v34 = vadd.f32 %v293_v55, %v1925_v14 }
  0xeb   :  { %1205 = vst [vmem:[%s2086_s3 + $0xe0] sm:$0xff] %v1935_v37  ;;  %v534_v35 = vadd.f32 %v533_v56, %v1935_v37  ;;  %v811_v12 = vadd.f32 %v810_v36, %v796_v30  ;;  %v572_v61 = vadd.f32 %v571_v31, %v557_v63 }
  0xed   :  { %v720_v39 = vpop.f32.mrf.mxu2  ;;  %v960_v60 = vpop.f32.mrf.mxu3 }
  0xee   :  { %v1962_v3 = vadd.f32 %v1603_v40, %v720_v39  ;;  %v211_v5 = vpop.f32.mrf.mxu0  ;;  %v482_v7 = vpop.f32.mrf.mxu1  ;;  %v1967_v11 = vadd.f32 %v1603_v40, %v960_v60  ;;  %v1051_v39 = vadd.f32 %v1050_v41, %v1036_v59  ;;  %v332_v60 = vadd.f32 %v331_v0, %v317_v62 }
  0xef   :  { %v1970_v16 = vadd.f32 %v1603_v40, %v211_v5  ;;  %v1973_v43 = vadd.f32 %v1603_v40, %v482_v7 }
  0xf0   :  { %1289 = vst [vmem:[%s2086_s3 + $0x160] sm:$0xff] %v1962_v3  ;;  %v797_v57 = vmul.f32 %v1962_v3, %v1962_v3  ;;  %v1037_v58 = vmul.f32 %v1967_v11, %v1967_v11  ;;  %v774_v14 = vadd.f32 %v773_v53, %v1962_v3  ;;  %v1014_v37 = vadd.f32 %v1013_v54, %v1967_v11 }
  0xf1   :  { %1373 = vst [vmem:[%s2086_s3 + $0x1e0] sm:$0xff] %v1967_v11  ;;  %v318_v38 = vmul.f32 %v1970_v16, %v1970_v16  ;;  %v558_v10 = vmul.f32 %v1973_v43, %v1973_v43  ;;  %v295_v9 = vadd.f32 %v294_v34, %v1970_v16  ;;  %v535_v46 = vadd.f32 %v534_v35, %v1973_v43 }
  0xf2   :  { %232 = vst [vmem:[%s2086_s3 + $0x68] sm:$0xff] %v1970_v16  ;;  %v812_v5 = vadd.f32 %v811_v12, %v797_v57  ;;  %v1052_v7 = vadd.f32 %v1051_v39, %v1037_v58 }
  0xf3   :  { %1206 = vst [vmem:[%s2086_s3 + $0xe8] sm:$0xff] %v1973_v43  ;;  %v333_v21 = vadd.f32 %v332_v60, %v318_v38  ;;  %v573_v24 = vadd.f32 %v572_v61, %v558_v10 }
  0xf5   :  { %v722_v15 = vpop.f32.mrf.mxu2  ;;  %v962_v26 = vpop.f32.mrf.mxu3 }
  0xf6   :  { %v723_v42 = vadd.f32 %v1603_v40, %v722_v15  ;;  %v963_v44 = vadd.f32 %v1603_v40, %v962_v26  ;;  %v214_v45 = vpop.f32.mrf.mxu0  ;;  %v485_v29 = vpop.f32.mrf.mxu1 }
  0xf7   :  { %v215_v49 = vadd.f32 %v1603_v40, %v214_v45  ;;  %v486_v50 = vadd.f32 %v1603_v40, %v485_v29 }
  0xf8   :  { %1290 = vst [vmem:[%s2086_s3 + $0x168] sm:$0xff] %v723_v42  ;;  %v798_v13 = vmul.f32 %v723_v42, %v723_v42  ;;  %v1038_v16 = vmul.f32 %v963_v44, %v963_v44  ;;  %v775_v52 = vadd.f32 %v774_v14, %v723_v42  ;;  %v1015_v27 = vadd.f32 %v1014_v37, %v963_v44 }
  0xf9   :  { %1374 = vst [vmem:[%s2086_s3 + $0x1e8] sm:$0xff] %v963_v44  ;;  %v319_v1 = vmul.f32 %v215_v49, %v215_v49  ;;  %v559_v2 = vmul.f32 %v486_v50, %v486_v50  ;;  %v296_v47 = vadd.f32 %v295_v9, %v215_v49  ;;  %v536_v11 = vadd.f32 %v535_v46, %v486_v50 }
  0xfa   :  { %233 = vst [vmem:[%s2086_s3 + $0x70] sm:$0xff] %v215_v49  ;;  %v813_v26 = vadd.f32 %v812_v5, %v798_v13  ;;  %v1053_v36 = vadd.f32 %v1052_v7, %v1038_v16 }
  0xfb   :  { %1207 = vst [vmem:[%s2086_s3 + $0xf0] sm:$0xff] %v486_v50  ;;  %v334_v19 = vadd.f32 %v333_v21, %v319_v1  ;;  %v574_v43 = vadd.f32 %v573_v24, %v559_v2 }
  0xfd   :  { %v725_v17 = vpop.f32.mrf.mxu2  ;;  %v965_v20 = vpop.f32.mrf.mxu3 }
  0xfe   :  { %v726_v4 = vadd.f32 %v1603_v40, %v725_v17  ;;  %v966_v18 = vadd.f32 %v1603_v40, %v965_v20  ;;  %v216_v6 = vpop.f32.mrf.mxu0  ;;  %v487_v3 = vpop.f32.mrf.mxu1 }
  0xff   :  { %v217_v48 = vadd.f32 %v1603_v40, %v216_v6  ;;  %v488_v8 = vadd.f32 %v1603_v40, %v487_v3 }
 0x100   :  { %1291 = vst [vmem:[%s2086_s3 + $0x170] sm:$0xff] %v726_v4  ;;  %v799_v28 = vmul.f32 %v726_v4, %v726_v4  ;;  %v1039_v32 = vmul.f32 %v966_v18, %v966_v18  ;;  %v776_v41 = vadd.f32 %v775_v52, %v726_v4  ;;  %v1016_v45 = vadd.f32 %v1015_v27, %v966_v18 }
 0x101   :  { %1375 = vst [vmem:[%s2086_s3 + $0x1f0] sm:$0xff] %v966_v18  ;;  %v297_v22 = vadd.f32 %v296_v47, %v217_v48  ;;  %v320_v23 = vmul.f32 %v217_v48, %v217_v48  ;;  %v537_v25 = vadd.f32 %v536_v11, %v488_v8  ;;  %v560_v51 = vmul.f32 %v488_v8, %v488_v8 }
 0x102   :  { %234 = vst [vmem:[%s2086_s3 + $0x78] sm:$0xff] %v217_v48  ;;  %v814_v63 = vadd.f32 %v813_v26, %v799_v28  ;;  %v1054_v0 = vadd.f32 %v1053_v36, %v1039_v32 }
 0x103   :  { %v298_v33 = vrot.slane %v297_v22, 4  ;;  %v335_v55 = vadd.f32 %v334_v19, %v320_v23  ;;  %1208 = vst [vmem:[%s2086_s3 + $0xf8] sm:$0xff] %v488_v8  ;;  %v538_v56 = vrot.slane %v537_v25, 4  ;;  %v575_v15 = vadd.f32 %v574_v43, %v560_v51 }
 0x105   :  { %v299_v42 = vadd.f32 %v298_v33, %v297_v22  ;;  %v336_v44 = vrot.slane %v335_v55, 4  ;;  %v539_v29 = vadd.f32 %v538_v56, %v537_v25  ;;  %v576_v30 = vrot.slane %v575_v15, 4  ;;  %v727_v59 = vpop.f32.mrf.mxu2  ;;  %v967_v62 = vpop.f32.mrf.mxu3 }
 0x106   :  { %v728_v31 = vadd.f32 %v1603_v40, %v727_v59  ;;  %v968_v49 = vadd.f32 %v1603_v40, %v967_v62 }
 0x107   :  { %v300_v50 = vrot.slane %v299_v42, 2  ;;  %v337_v53 = vadd.f32 %v336_v44, %v335_v55  ;;  %v540_v54 = vrot.slane %v539_v29, 2  ;;  %v577_v57 = vadd.f32 %v576_v30, %v575_v15 }
 0x108   :  { %1292 = vst [vmem:[%s2086_s3 + $0x178] sm:$0xff] %v728_v31  ;;  %v777_v58 = vadd.f32 %v776_v41, %v728_v31  ;;  %v800_v34 = vmul.f32 %v728_v31, %v728_v31  ;;  %v1017_v35 = vadd.f32 %v1016_v45, %v968_v49  ;;  %v1040_v38 = vmul.f32 %v968_v49, %v968_v49 }
 0x109   :  { %v301_v10 = vadd.f32 %v300_v50, %v299_v42  ;;  %v338_v12 = vrot.slane %v337_v53, 2  ;;  %v541_v39 = vadd.f32 %v540_v54, %v539_v29  ;;  %v578_v60 = vrot.slane %v577_v57, 2  ;;  %1376 = vst [vmem:[%s2086_s3 + $0x1f8] sm:$0xff] %v968_v49 }
 0x10a   :  { %v778_v40 = vrot.slane %v777_v58, 4  ;;  %v815_v61 = vadd.f32 %v814_v63, %v800_v34  ;;  %v1018_v14 = vrot.slane %v1017_v35, 4  ;;  %v1055_v37 = vadd.f32 %v1054_v0, %v1040_v38 }
 0x10b   :  { %v302_v1 = vrot.slane %v301_v10, 1  ;;  %v339_v2 = vadd.f32 %v338_v12, %v337_v53  ;;  %v542_v5 = vrot.slane %v541_v39, 1  ;;  %v579_v7 = vadd.f32 %v578_v60, %v577_v57 }
 0x10c   :  { %v779_v9 = vadd.f32 %v778_v40, %v777_v58  ;;  %v816_v46 = vrot.slane %v815_v61, 4  ;;  %v1019_v17 = vadd.f32 %v1018_v14, %v1017_v35  ;;  %v1056_v20 = vrot.slane %v1055_v37, 4 }
 0x10d   :  { %v303_v21 = vadd.f32 %v302_v1, %v301_v10  ;;  %v340_v24 = vrot.slane %v339_v2, 1  ;;  %v543_v4 = vadd.f32 %v542_v5, %v541_v39  ;;  %v580_v18 = vrot.slane %v579_v7, 1 }
 0x10e   :  { %v780_v6 = vrot.slane %v779_v9, 2  ;;  %v817_v3 = vadd.f32 %v816_v46, %v815_v61  ;;  %v1020_v47 = vrot.slane %v1019_v17, 2  ;;  %v1057_v11 = vadd.f32 %v1056_v20, %v1055_v37 }
 0x10f   :  { %v341_v48 = vadd.f32 %v340_v24, %v339_v2  ;;  %v544_v8 = vadd.f32 %v543_v4, %v303_v21  ;;  %v581_v13 = vadd.f32 %v580_v18, %v579_v7 }
 0x110   :  { %v781_v16 = vadd.f32 %v780_v6, %v779_v9  ;;  %v818_v19 = vrot.slane %v817_v3, 2  ;;  %v1021_v43 = vadd.f32 %v1020_v47, %v1019_v17  ;;  %v1058_v22 = vrot.slane %v1057_v11, 2 }
 0x111   :  { %v582_v23 = vadd.f32 %v581_v13, %v341_v48 }
 0x112   :  { %v782_v25 = vrot.slane %v781_v16, 1  ;;  %v819_v51 = vadd.f32 %v818_v19, %v817_v3  ;;  %v1022_v52 = vrot.slane %v1021_v43, 1  ;;  %v1059_v27 = vadd.f32 %v1058_v22, %v1057_v11 }
 0x114   :  { %v783_v28 = vadd.f32 %v782_v25, %v781_v16  ;;  %v820_v32 = vrot.slane %v819_v51, 1  ;;  %v1060_v33 = vrot.slane %v1059_v27, 1  ;;  %v1023_v15 = vadd.f32 %v1022_v52, %v1021_v43 }
 0x116   :  { %v784_v55 = vadd.f32 %v783_v28, %v544_v8  ;;  %v821_v56 = vadd.f32 %v820_v32, %v819_v51  ;;  %v1061_v41 = vadd.f32 %v1060_v33, %v1059_v27 }
 0x118   :  { %v822_v26 = vadd.f32 %v821_v56, %v582_v23  ;;  %v1024_v36 = vadd.f32 %v1023_v15, %v784_v55 }
 0x11a   :  { %v1062_v45 = vadd.f32 %v1061_v41, %v822_v26  ;;  %1063 = vst [vmem:[%s2087_s4] sm:$0xff] %v1024_v36 }
 0x11c   :  { %1064 = vst [vmem:[%s2088_s5] sm:$0xff] %v1062_v45 }

// kernel: unet_innermost_forward.5
= control target key start
LH: loop header
LB: loop body
LE: loop exit
PB: predicated region body
PF: predicated region fallthrough
CT: control target
= control target key end

     0   :  { %s829_s0 = inlined_call_operand.vmem [shape: f32[4,128,128], index: 0, kind: input, shape index: {}]   ;;  %s830_s1 = inlined_call_operand.vmem [shape: f32[1,128], index: 1, kind: input, shape index: {}]   ;;  %s831_s2 = inlined_call_operand.vmem [shape: f32[1,128], index: 2, kind: input, shape index: {}]   ;;  %s832_s3 = inlined_call_operand.vmem [shape: f32[4,128,128], index: 3, kind: output, shape index: {}]  }
   0x1   :  { %v14_v0 = vld [vmem:[%s829_s0] sm:$0xff]  ;;  %v15_v3 = vld [vmem:[%s829_s0 + $0x8] sm:$0xff]  ;;  %v16_v6 = vld [vmem:[%s829_s0 + $0x10] sm:$0xff] }
   0x2   :  { %v310_v1 = vld [vmem:[%s830_s1] ss:$0 sm:$0xff]  ;;  %v17_v7 = vld [vmem:[%s829_s0 + $0x18] sm:$0xff]  ;;  %v19_v12 = vld [vmem:[%s829_s0 + $0x28] sm:$0xff] }
   0x3   :  { %v315_v2 = vld [vmem:[%s831_s2] ss:$0 sm:$0xff]  ;;  %v82_v4 = vmul.f32 %v310_v1, %v14_v0  ;;  %v83_v5 = vmul.f32 %v310_v1, %v15_v3  ;;  %v84_v9 = vmul.f32 %v310_v1, %v16_v6  ;;  %v85_v10 = vmul.f32 %v310_v1, %v17_v7  ;;  %v20_v13 = vld [vmem:[%s829_s0 + $0x30] sm:$0xff]  ;;  %v21_v14 = vld [vmem:[%s829_s0 + $0x38] sm:$0xff] }
   0x4   :  { %v18_v8 = vld [vmem:[%s829_s0 + $0x20] sm:$0xff]  ;;  %v87_v17 = vmul.f32 %v310_v1, %v19_v12  ;;  %v88_v18 = vmul.f32 %v310_v1, %v20_v13  ;;  %v23_v20 = vld [vmem:[%s829_s0 + $0x48] sm:$0xff]  ;;  %v89_v23 = vmul.f32 %v310_v1, %v21_v14  ;;  %v24_v24 = vld [vmem:[%s829_s0 + $0x50] sm:$0xff] }
   0x5   :  { %v86_v11 = vmul.f32 %v310_v1, %v18_v8  ;;  %v150_v15 = vadd.f32 %v315_v2, %v82_v4  ;;  %v151_v16 = vadd.f32 %v315_v2, %v83_v5  ;;  %v22_v19 = vld [vmem:[%s829_s0 + $0x40] sm:$0xff]  ;;  %v152_v21 = vadd.f32 %v315_v2, %v84_v9  ;;  %v25_v27 = vld [vmem:[%s829_s0 + $0x58] sm:$0xff]  ;;  %v27_v33 = vld [vmem:[%s829_s0 + $0x68] sm:$0xff] }
   0x6   :  { %v153_v22 = vadd.f32 %v315_v2, %v85_v10  ;;  %v90_v26 = vmul.f32 %v310_v1, %v22_v19  ;;  %v155_v28 = vadd.f32 %v315_v2, %v87_v17  ;;  %v91_v29 = vmul.f32 %v310_v1, %v23_v20  ;;  %v26_v30 = vld [vmem:[%s829_s0 + $0x60] sm:$0xff]  ;;  %v28_v36 = vld [vmem:[%s829_s0 + $0x70] sm:$0xff]  ;;  %v29_v39 = vld [vmem:[%s829_s0 + $0x78] sm:$0xff] }
   0x7   :  { %214 = vst [vmem:[%s832_s3] sm:$0xff] %v150_v15  ;;  %v154_v25 = vadd.f32 %v315_v2, %v86_v11  ;;  %v156_v31 = vadd.f32 %v315_v2, %v88_v18  ;;  %v92_v32 = vmul.f32 %v310_v1, %v24_v24  ;;  %v157_v34 = vadd.f32 %v315_v2, %v89_v23  ;;  %v30_v42 = vld [vmem:[%s829_s0 + $0x80] sm:$0xff]  ;;  %v31_v45 = vld [vmem:[%s829_s0 + $0x88] sm:$0xff]  ;;  %v32_v48 = vld [vmem:[%s829_s0 + $0x90] sm:$0xff] }
   0x8   :  { %215 = vst [vmem:[%s832_s3 + $0x8] sm:$0xff] %v151_v16  ;;  %v93_v35 = vmul.f32 %v310_v1, %v25_v27  ;;  %v158_v37 = vadd.f32 %v315_v2, %v90_v26  ;;  %v94_v38 = vmul.f32 %v310_v1, %v26_v30  ;;  %v159_v40 = vadd.f32 %v315_v2, %v91_v29  ;;  %v33_v51 = vld [vmem:[%s829_s0 + $0x98] sm:$0xff]  ;;  %v34_v54 = vld [vmem:[%s829_s0 + $0xa0] sm:$0xff]  ;;  %v35_v57 = vld [vmem:[%s829_s0 + $0xa8] sm:$0xff] }
   0x9   :  { %216 = vst [vmem:[%s832_s3 + $0x10] sm:$0xff] %v152_v21  ;;  %v95_v41 = vmul.f32 %v310_v1, %v27_v33  ;;  %v160_v43 = vadd.f32 %v315_v2, %v92_v32  ;;  %v96_v44 = vmul.f32 %v310_v1, %v28_v36  ;;  %v97_v47 = vmul.f32 %v310_v1, %v29_v39  ;;  %v36_v60 = vld [vmem:[%s829_s0 + $0xb0] sm:$0xff]  ;;  %v37_v63 = vld [vmem:[%s829_s0 + $0xb8] sm:$0xff]  ;;  %v38_v4 = vld [vmem:[%s829_s0 + $0xc0] sm:$0xff] }
   0xa   :  { %217 = vst [vmem:[%s832_s3 + $0x18] sm:$0xff] %v153_v22  ;;  %v161_v46 = vadd.f32 %v315_v2, %v93_v35  ;;  %v162_v49 = vadd.f32 %v315_v2, %v94_v38  ;;  %v98_v50 = vmul.f32 %v310_v1, %v30_v42  ;;  %v99_v53 = vmul.f32 %v310_v1, %v31_v45  ;;  %v39_v7 = vld [vmem:[%s829_s0 + $0xc8] sm:$0xff]  ;;  %v40_v10 = vld [vmem:[%s829_s0 + $0xd0] sm:$0xff]  ;;  %v41_v13 = vld [vmem:[%s829_s0 + $0xd8] sm:$0xff] }
   0xb   :  { %218 = vst [vmem:[%s832_s3 + $0x20] sm:$0xff] %v154_v25  ;;  %v163_v52 = vadd.f32 %v315_v2, %v95_v41  ;;  %v164_v55 = vadd.f32 %v315_v2, %v96_v44  ;;  %v100_v56 = vmul.f32 %v310_v1, %v32_v48  ;;  %v165_v58 = vadd.f32 %v315_v2, %v97_v47  ;;  %v42_v16 = vld [vmem:[%s829_s0 + $0xe0] sm:$0xff]  ;;  %v43_v19 = vld [vmem:[%s829_s0 + $0xe8] sm:$0xff]  ;;  %v44_v22 = vld [vmem:[%s829_s0 + $0xf0] sm:$0xff] }
   0xc   :  { %219 = vst [vmem:[%s832_s3 + $0x28] sm:$0xff] %v155_v28  ;;  %v101_v59 = vmul.f32 %v310_v1, %v33_v51  ;;  %v166_v61 = vadd.f32 %v315_v2, %v98_v50  ;;  %v102_v62 = vmul.f32 %v310_v1, %v34_v54  ;;  %v167_v0 = vadd.f32 %v315_v2, %v99_v53  ;;  %v45_v25 = vld [vmem:[%s829_s0 + $0xf8] sm:$0xff]  ;;  %v46_v28 = vld [vmem:[%s829_s0 + $0x100] sm:$0xff]  ;;  %v51_v44 = vld [vmem:[%s829_s0 + $0x128] sm:$0xff] }
   0xd   :  { %220 = vst [vmem:[%s832_s3 + $0x30] sm:$0xff] %v156_v31  ;;  %v103_v3 = vmul.f32 %v310_v1, %v35_v57  ;;  %v168_v5 = vadd.f32 %v315_v2, %v100_v56  ;;  %v104_v6 = vmul.f32 %v310_v1, %v36_v60  ;;  %v105_v9 = vmul.f32 %v310_v1, %v37_v63  ;;  %v47_v31 = vld [vmem:[%s829_s0 + $0x108] sm:$0xff]  ;;  %v77_v41 = vld [vmem:[%s829_s0 + $0x1f8] sm:$0xff]  ;;  %v52_v47 = vld [vmem:[%s829_s0 + $0x130] sm:$0xff] }
   0xe   :  { %221 = vst [vmem:[%s832_s3 + $0x38] sm:$0xff] %v157_v34  ;;  %v169_v8 = vadd.f32 %v315_v2, %v101_v59  ;;  %v170_v11 = vadd.f32 %v315_v2, %v102_v62  ;;  %v106_v12 = vmul.f32 %v310_v1, %v38_v4  ;;  %v107_v15 = vmul.f32 %v310_v1, %v39_v7  ;;  %v48_v34 = vld [vmem:[%s829_s0 + $0x110] sm:$0xff]  ;;  %v53_v51 = vld [vmem:[%s829_s0 + $0x138] sm:$0xff]  ;;  %v54_v54 = vld [vmem:[%s829_s0 + $0x140] sm:$0xff] }
   0xf   :  { %222 = vst [vmem:[%s832_s3 + $0x40] sm:$0xff] %v158_v37  ;;  %v171_v14 = vadd.f32 %v315_v2, %v103_v3  ;;  %v172_v17 = vadd.f32 %v315_v2, %v104_v6  ;;  %v108_v18 = vmul.f32 %v310_v1, %v40_v10  ;;  %v173_v20 = vadd.f32 %v315_v2, %v105_v9  ;;  %v49_v37 = vld [vmem:[%s829_s0 + $0x118] sm:$0xff] }
  0x10   :  { %223 = vst [vmem:[%s832_s3 + $0x48] sm:$0xff] %v159_v40  ;;  %v109_v21 = vmul.f32 %v310_v1, %v41_v13  ;;  %v174_v23 = vadd.f32 %v315_v2, %v106_v12  ;;  %v110_v24 = vmul.f32 %v310_v1, %v42_v16  ;;  %v175_v26 = vadd.f32 %v315_v2, %v107_v15  ;;  %v50_v40 = vld [vmem:[%s829_s0 + $0x120] sm:$0xff] }
  0x11   :  { %224 = vst [vmem:[%s832_s3 + $0x50] sm:$0xff] %v160_v43  ;;  %v111_v27 = vmul.f32 %v310_v1, %v43_v19  ;;  %v176_v29 = vadd.f32 %v315_v2, %v108_v18  ;;  %v112_v30 = vmul.f32 %v310_v1, %v44_v22  ;;  %v113_v33 = vmul.f32 %v310_v1, %v45_v25 }
  0x12   :  { %225 = vst [vmem:[%s832_s3 + $0x58] sm:$0xff] %v161_v46  ;;  %v177_v32 = vadd.f32 %v315_v2, %v109_v21  ;;  %v178_v35 = vadd.f32 %v315_v2, %v110_v24  ;;  %v114_v36 = vmul.f32 %v310_v1, %v46_v28  ;;  %v115_v39 = vmul.f32 %v310_v1, %v47_v31 }
  0x13   :  { %226 = vst [vmem:[%s832_s3 + $0x60] sm:$0xff] %v162_v49  ;;  %v179_v38 = vadd.f32 %v315_v2, %v111_v27  ;;  %v180_v42 = vadd.f32 %v315_v2, %v112_v30  ;;  %v116_v43 = vmul.f32 %v310_v1, %v48_v34  ;;  %v181_v45 = vadd.f32 %v315_v2, %v113_v33 }
  0x14   :  { %227 = vst [vmem:[%s832_s3 + $0x68] sm:$0xff] %v163_v52  ;;  %v117_v46 = vmul.f32 %v310_v1, %v49_v37  ;;  %v145_v48 = vmul.f32 %v310_v1, %v77_v41  ;;  %v182_v49 = vadd.f32 %v315_v2, %v114_v36  ;;  %v118_v50 = vmul.f32 %v310_v1, %v50_v40  ;;  %v70_v41 = vld [vmem:[%s829_s0 + $0x1c0] sm:$0xff] }
  0x15   :  { %228 = vst [vmem:[%s832_s3 + $0x70] sm:$0xff] %v164_v55  ;;  %v183_v52 = vadd.f32 %v315_v2, %v115_v39  ;;  %v119_v53 = vmul.f32 %v310_v1, %v51_v44  ;;  %v184_v56 = vadd.f32 %v315_v2, %v116_v43  ;;  %v120_v57 = vmul.f32 %v310_v1, %v52_v47  ;;  %v71_v44 = vld [vmem:[%s829_s0 + $0x1c8] sm:$0xff]  ;;  %v72_v47 = vld [vmem:[%s829_s0 + $0x1d0] sm:$0xff] }
  0x16   :  { %229 = vst [vmem:[%s832_s3 + $0x78] sm:$0xff] %v165_v58  ;;  %v604_v55 = vadd.f32 %v315_v2, %v145_v48  ;;  %v55_v58 = vld [vmem:[%s829_s0 + $0x148] sm:$0xff]  ;;  %v185_v59 = vadd.f32 %v315_v2, %v117_v46  ;;  %v121_v60 = vmul.f32 %v310_v1, %v53_v51  ;;  %v186_v62 = vadd.f32 %v315_v2, %v118_v50  ;;  %v73_v50 = vld [vmem:[%s829_s0 + $0x1d8] sm:$0xff] }
  0x17   :  { %230 = vst [vmem:[%s832_s3 + $0x80] sm:$0xff] %v166_v61  ;;  %v56_v61 = vld [vmem:[%s829_s0 + $0x150] sm:$0xff]  ;;  %v122_v63 = vmul.f32 %v310_v1, %v54_v54  ;;  %v187_v3 = vadd.f32 %v315_v2, %v119_v53  ;;  %v123_v4 = vmul.f32 %v310_v1, %v55_v58  ;;  %v188_v6 = vadd.f32 %v315_v2, %v120_v57  ;;  %v74_v53 = vld [vmem:[%s829_s0 + $0x1e0] sm:$0xff]  ;;  %v75_v57 = vld [vmem:[%s829_s0 + $0x1e8] sm:$0xff] }
  0x18   :  { %231 = vst [vmem:[%s832_s3 + $0x88] sm:$0xff] %v167_v0  ;;  %v57_v0 = vld [vmem:[%s829_s0 + $0x158] sm:$0xff]  ;;  %v124_v7 = vmul.f32 %v310_v1, %v56_v61  ;;  %v189_v9 = vadd.f32 %v315_v2, %v121_v60  ;;  %v76_v60 = vld [vmem:[%s829_s0 + $0x1f0] sm:$0xff] }
  0x19   :  { %232 = vst [vmem:[%s832_s3 + $0x90] sm:$0xff] %v168_v5  ;;  %v58_v5 = vld [vmem:[%s829_s0 + $0x160] sm:$0xff]  ;;  %v125_v10 = vmul.f32 %v310_v1, %v57_v0  ;;  %v190_v12 = vadd.f32 %v315_v2, %v122_v63  ;;  %v191_v15 = vadd.f32 %v315_v2, %v123_v4  ;;  %v143_v0 = vmul.f32 %v310_v1, %v75_v57 }
  0x1a   :  { %233 = vst [vmem:[%s832_s3 + $0x98] sm:$0xff] %v169_v8  ;;  %v59_v8 = vld [vmem:[%s829_s0 + $0x168] sm:$0xff]  ;;  %v126_v13 = vmul.f32 %v310_v1, %v58_v5  ;;  %v192_v18 = vadd.f32 %v315_v2, %v124_v7  ;;  %v144_v4 = vmul.f32 %v310_v1, %v76_v60 }
  0x1b   :  { %234 = vst [vmem:[%s832_s3 + $0xa0] sm:$0xff] %v170_v11  ;;  %v60_v11 = vld [vmem:[%s829_s0 + $0x170] sm:$0xff]  ;;  %v127_v16 = vmul.f32 %v310_v1, %v59_v8  ;;  %v193_v21 = vadd.f32 %v315_v2, %v125_v10  ;;  %v211_v7 = vadd.f32 %v315_v2, %v143_v0 }
  0x1c   :  { %235 = vst [vmem:[%s832_s3 + $0xa8] sm:$0xff] %v171_v14  ;;  %v61_v14 = vld [vmem:[%s829_s0 + $0x178] sm:$0xff]  ;;  %v128_v19 = vmul.f32 %v310_v1, %v60_v11  ;;  %v194_v24 = vadd.f32 %v315_v2, %v126_v13 }
  0x1d   :  { %236 = vst [vmem:[%s832_s3 + $0xb0] sm:$0xff] %v172_v17  ;;  %v62_v17 = vld [vmem:[%s829_s0 + $0x180] sm:$0xff]  ;;  %v129_v22 = vmul.f32 %v310_v1, %v61_v14  ;;  %v195_v27 = vadd.f32 %v315_v2, %v127_v16 }
  0x1e   :  { %237 = vst [vmem:[%s832_s3 + $0xb8] sm:$0xff] %v173_v20  ;;  %v63_v20 = vld [vmem:[%s829_s0 + $0x188] sm:$0xff]  ;;  %v130_v25 = vmul.f32 %v310_v1, %v62_v17  ;;  %v196_v30 = vadd.f32 %v315_v2, %v128_v19 }
  0x1f   :  { %238 = vst [vmem:[%s832_s3 + $0xc0] sm:$0xff] %v174_v23  ;;  %v64_v23 = vld [vmem:[%s829_s0 + $0x190] sm:$0xff]  ;;  %v131_v28 = vmul.f32 %v310_v1, %v63_v20  ;;  %v197_v33 = vadd.f32 %v315_v2, %v129_v22 }
  0x20   :  { %239 = vst [vmem:[%s832_s3 + $0xc8] sm:$0xff] %v175_v26  ;;  %v65_v26 = vld [vmem:[%s829_s0 + $0x198] sm:$0xff]  ;;  %v132_v31 = vmul.f32 %v310_v1, %v64_v23  ;;  %v198_v36 = vadd.f32 %v315_v2, %v130_v25 }
  0x21   :  { %240 = vst [vmem:[%s832_s3 + $0xd0] sm:$0xff] %v176_v29  ;;  %v66_v29 = vld [vmem:[%s829_s0 + $0x1a0] sm:$0xff]  ;;  %v133_v34 = vmul.f32 %v310_v1, %v65_v26  ;;  %v199_v39 = vadd.f32 %v315_v2, %v131_v28 }
  0x22   :  { %241 = vst [vmem:[%s832_s3 + $0xd8] sm:$0xff] %v177_v32  ;;  %v67_v32 = vld [vmem:[%s829_s0 + $0x1a8] sm:$0xff]  ;;  %v134_v37 = vmul.f32 %v310_v1, %v66_v29 }
  0x23   :  { %242 = vst [vmem:[%s832_s3 + $0xe0] sm:$0xff] %v178_v35  ;;  %v68_v35 = vld [vmem:[%s829_s0 + $0x1b0] sm:$0xff]  ;;  %v135_v40 = vmul.f32 %v310_v1, %v67_v32 }
  0x24   :  { %243 = vst [vmem:[%s832_s3 + $0xe8] sm:$0xff] %v179_v38  ;;  %v69_v38 = vld [vmem:[%s829_s0 + $0x1b8] sm:$0xff]  ;;  %v136_v43 = vmul.f32 %v310_v1, %v68_v35  ;;  %v202_v48 = vadd.f32 %v315_v2, %v134_v37 }
  0x25   :  { %244 = vst [vmem:[%s832_s3 + $0xf0] sm:$0xff] %v180_v42  ;;  %v200_v42 = vadd.f32 %v315_v2, %v132_v31  ;;  %v137_v46 = vmul.f32 %v310_v1, %v69_v38  ;;  %v203_v51 = vadd.f32 %v315_v2, %v135_v40 }
  0x26   :  { %245 = vst [vmem:[%s832_s3 + $0xf8] sm:$0xff] %v181_v45  ;;  %v201_v45 = vadd.f32 %v315_v2, %v133_v34  ;;  %v204_v54 = vadd.f32 %v315_v2, %v136_v43 }
  0x27   :  { %246 = vst [vmem:[%s832_s3 + $0x100] sm:$0xff] %v182_v49  ;;  %v138_v49 = vmul.f32 %v310_v1, %v70_v41  ;;  %v205_v58 = vadd.f32 %v315_v2, %v137_v46 }
  0x28   :  { %247 = vst [vmem:[%s832_s3 + $0x108] sm:$0xff] %v183_v52  ;;  %v139_v52 = vmul.f32 %v310_v1, %v71_v44 }
  0x29   :  { %248 = vst [vmem:[%s832_s3 + $0x110] sm:$0xff] %v184_v56  ;;  %v140_v56 = vmul.f32 %v310_v1, %v72_v47  ;;  %v206_v61 = vadd.f32 %v315_v2, %v138_v49 }
  0x2a   :  { %249 = vst [vmem:[%s832_s3 + $0x118] sm:$0xff] %v185_v59  ;;  %v141_v59 = vmul.f32 %v310_v1, %v73_v50  ;;  %v207_v63 = vadd.f32 %v315_v2, %v139_v52 }
  0x2b   :  { %250 = vst [vmem:[%s832_s3 + $0x120] sm:$0xff] %v186_v62  ;;  %v142_v62 = vmul.f32 %v310_v1, %v74_v53  ;;  %v212_v1 = vadd.f32 %v315_v2, %v144_v4 }
  0x2c   :  { %251 = vst [vmem:[%s832_s3 + $0x128] sm:$0xff] %v187_v3  ;;  %v208_v3 = vadd.f32 %v315_v2, %v140_v56  ;;  %v209_v5 = vadd.f32 %v315_v2, %v141_v59 }
  0x2d   :  { %252 = vst [vmem:[%s832_s3 + $0x130] sm:$0xff] %v188_v6  ;;  %v210_v6 = vadd.f32 %v315_v2, %v142_v62 }
  0x2e   :  { %253 = vst [vmem:[%s832_s3 + $0x138] sm:$0xff] %v189_v9 }
  0x2f   :  { %254 = vst [vmem:[%s832_s3 + $0x140] sm:$0xff] %v190_v12 }
  0x30   :  { %255 = vst [vmem:[%s832_s3 + $0x148] sm:$0xff] %v191_v15 }
  0x31   :  { %256 = vst [vmem:[%s832_s3 + $0x150] sm:$0xff] %v192_v18 }
  0x32   :  { %257 = vst [vmem:[%s832_s3 + $0x158] sm:$0xff] %v193_v21 }
  0x33   :  { %258 = vst [vmem:[%s832_s3 + $0x160] sm:$0xff] %v194_v24 }
  0x34   :  { %259 = vst [vmem:[%s832_s3 + $0x168] sm:$0xff] %v195_v27 }
  0x35   :  { %260 = vst [vmem:[%s832_s3 + $0x170] sm:$0xff] %v196_v30 }
  0x36   :  { %261 = vst [vmem:[%s832_s3 + $0x178] sm:$0xff] %v197_v33 }
  0x37   :  { %262 = vst [vmem:[%s832_s3 + $0x180] sm:$0xff] %v198_v36 }
  0x38   :  { %263 = vst [vmem:[%s832_s3 + $0x188] sm:$0xff] %v199_v39 }
  0x39   :  { %264 = vst [vmem:[%s832_s3 + $0x190] sm:$0xff] %v200_v42 }
  0x3a   :  { %265 = vst [vmem:[%s832_s3 + $0x198] sm:$0xff] %v201_v45 }
  0x3b   :  { %266 = vst [vmem:[%s832_s3 + $0x1a0] sm:$0xff] %v202_v48 }
  0x3c   :  { %267 = vst [vmem:[%s832_s3 + $0x1a8] sm:$0xff] %v203_v51 }
  0x3d   :  { %268 = vst [vmem:[%s832_s3 + $0x1b0] sm:$0xff] %v204_v54 }
  0x3e   :  { %269 = vst [vmem:[%s832_s3 + $0x1b8] sm:$0xff] %v205_v58 }
  0x3f   :  { %270 = vst [vmem:[%s832_s3 + $0x1c0] sm:$0xff] %v206_v61 }
  0x40   :  { %271 = vst [vmem:[%s832_s3 + $0x1c8] sm:$0xff] %v207_v63 }
  0x41   :  { %272 = vst [vmem:[%s832_s3 + $0x1d0] sm:$0xff] %v208_v3 }
  0x42   :  { %273 = vst [vmem:[%s832_s3 + $0x1d8] sm:$0xff] %v209_v5 }
  0x43   :  { %274 = vst [vmem:[%s832_s3 + $0x1e0] sm:$0xff] %v210_v6 }
  0x44   :  { %275 = vst [vmem:[%s832_s3 + $0x1e8] sm:$0xff] %v211_v7 }
  0x45   :  { %276 = vst [vmem:[%s832_s3 + $0x1f0] sm:$0xff] %v212_v1 }
  0x46   :  { %277 = vst [vmem:[%s832_s3 + $0x1f8] sm:$0xff] %v604_v55 }

</bundles_post_ra>
